<compile_context>
chip_gen: v5e
topology: v5e:2x2
jax: 0.10.0
libtpu: 0.0.40
codegen_flags: <defaults>
</compile_context>

<pallas_src>
import functools

import jax
import jax.numpy as jnp
from jax.experimental import pallas as pl
from jax.experimental.pallas import tpu as pltpu

_LANES = 128


def _tpu_vmem_capacity_bytes():
    cap = 128 * 1024 * 1024  # v5e / v6e physical VMEM per TensorCore
    try:
        info = pltpu.get_tpu_info()
        cap = int(getattr(info, "vmem_capacity_bytes", cap)) or cap
    except Exception:
        pass
    return cap


# Padded, double-buffered block budget: ~40 MiB on 128 MiB parts (v5e/v6e),
# ~21 MiB on 64 MiB parts (v7x).  Scoped VMEM limit gets headroom on top.
_VMEM_CAP = _tpu_vmem_capacity_bytes()
_VMEM_BLOCK_BUDGET = min(_VMEM_CAP // 3, 40 * 1024 * 1024)
_VMEM_LIMIT = int(min(2 * _VMEM_BLOCK_BUDGET + (8 << 20), _VMEM_CAP * 3 // 4))


def _ceil_to(x, m):
    return -(-x // m) * m


def _sublane_multiple(itemsize):
    # Packed sublane count: 8 (f32) / 16 (bf16) / 32 (int8).
    return max(8, 32 // max(int(itemsize), 1))


def _pick_group(rows, w, s):
    """Smallest g dividing rows such that one output group-row spans >=128 lanes."""
    out_row = s * w * s
    g0 = max(1, -(-_LANES // out_row))
    if g0 <= 1:
        return 1
    for g in range(g0, min(rows, 4 * g0) + 1):
        if rows % g == 0:
            return g
    for g in range(min(g0, rows) - 1, 0, -1):
        if rows % g == 0:
            return g
    return 1


def _pick_row_tile(rows_g, w_in, w_out, itemsize):
    """Row tile sized against PADDED, double-buffered VMEM; >=2 grid steps if possible."""
    sub = _sublane_multiple(itemsize)
    per_row = 2 * itemsize * (_ceil_to(w_in, _LANES) + _ceil_to(w_out, _LANES))
    tr = _VMEM_BLOCK_BUDGET // max(per_row, 1)
    tr = max(sub, (tr // sub) * sub)
    if rows_g >= 2 * sub:
        # Keep at least two grid steps so both v7x TensorCores get work.
        tr = min(tr, max(sub, (rows_g // 2 // sub) * sub))
    return min(tr, _ceil_to(rows_g, sub))


def _upsample_rows_kernel(x_ref, o_ref, *, g, w, s):
    """x_ref: (TR, g*w) input rows.  o_ref: (TR, g*s*w*s) lane-dense output rows.

    Each group packs g consecutive input rows; for every input row the s*w*s output
    values (s H-replicas of its w-repeated row) are contiguous in the output row.
    """
    x = x_ref[...]                              # (TR, g*w)
    xw = jnp.repeat(x, s, axis=-1)              # (TR, g*w*s): nearest W-repeat (lanes)
    ws = w * s
    # H-replication: re-store the same vregs s times per input row (no concat temp).
    for j in range(g):
        seg = xw[:, j * ws:(j + 1) * ws] if g > 1 else xw
        for k in range(s):
            p = (j * s + k) * ws
            o_ref[:, p:p + ws] = seg


@functools.partial(jax.jit, static_argnames=("scale_factor",))
def upsample_nearest(x, scale_factor=2):
    """Pallas TPU equivalent of F.interpolate(x, scale_factor, mode='nearest'), NCHW."""
    n, c, h, w = x.shape
    sf = float(scale_factor)
    assert sf > 0 and sf.is_integer(), (
        f"upsample_nearest only supports positive integer scale factors, got {scale_factor}")
    s = int(sf)
    if s == 1:
        return x

    rows = n * c * h
    g = _pick_group(rows, w, s)
    rows_g = rows // g
    w_in = g * w
    w_out = g * s * w * s
    itemsize = jnp.dtype(x.dtype).itemsize

    tr = _pick_row_tile(rows_g, w_in, w_out, itemsize)
    grid = (pl.cdiv(rows_g, tr),)

    in_bytes = rows * w * itemsize
    out_bytes = rows * s * w * s * itemsize
    cost = pl.CostEstimate(flops=0, transcendentals=0,
                           bytes_accessed=in_bytes + out_bytes)
    cparams = pltpu.CompilerParams(
        dimension_semantics=("parallel",),
        vmem_limit_bytes=_VMEM_LIMIT,
    )

    x2 = x.reshape(rows_g, w_in)                      # metadata-only reshape
    out2 = pl.pallas_call(
        functools.partial(_upsample_rows_kernel, g=g, w=w, s=s),
        out_shape=jax.ShapeDtypeStruct((rows_g, w_out), x.dtype),
        grid=grid,
        in_specs=[pl.BlockSpec((tr, w_in), lambda i: (i, 0))],
        out_specs=pl.BlockSpec((tr, w_out), lambda i: (i, 0)),
        compiler_params=cparams,
        cost_estimate=cost,
    )(x2)

    # Contiguous (metadata-only) reshape back to the upsampled NCHW layout.
    return out2.reshape(n, c, h * s, w * s)


def _reference(x, scale_factor=2):
    s = int(scale_factor)
    return jnp.repeat(jnp.repeat(x, s, axis=2), s, axis=3)


if __name__ == "__main__":
    key = jax.random.PRNGKey(0)
    # Small NCHW input consistent with the module's forward.
    x = jax.random.normal(key, (2, 4, 16, 16), dtype=jnp.float32)

    out = jax.block_until_ready(upsample_nearest(x, scale_factor=2))

    ref = _reference(x, 2)
    assert out.shape == (2, 4, 32, 32), out.shape
    assert out.dtype == x.dtype
    assert jnp.array_equal(out, ref), "mismatch vs reference nearest upsample"

    print("KERNEL_OK")
</pallas_src>

<mosaic_0001>
module attributes {stable_mosaic.version = 11 : i64} {
  func.func @_upsample_rows_kernel(%arg0: i32, %arg1: memref<32x32xf32, #tpu.memory_space<vmem>>, %arg2: memref<32x128xf32, #tpu.memory_space<vmem>>) attributes {dimension_semantics = [#tpu.dimension_semantics<parallel>], iteration_bounds = array<i64: 2>, scalar_prefetch = 0 : i64, scratch_operands = 0 : i64, tpu.core_type = #tpu.core_type<tc>, window_params = [{transform_indices = @transform_0, window_bounds = array<i64: 32, 32>}, {transform_indices = @transform_1, window_bounds = array<i64: 32, 128>}]} {
    %c0 = arith.constant 0 : index
    %c0_0 = arith.constant 0 : index
    %0 = vector.load %arg1[%c0, %c0_0] : memref<32x32xf32, #tpu.memory_space<vmem>>, vector<32x32xf32>
    %1 = vector.shape_cast %0 : vector<32x32xf32> to vector<32x32x1xf32>
    %2 = vector.broadcast %1 : vector<32x32x1xf32> to vector<32x32x2xf32>
    %3 = vector.shape_cast %2 : vector<32x32x2xf32> to vector<32x64xf32>
    %4 = vector.extract_strided_slice %3 {offsets = [0, 0], sizes = [32, 32], strides = [1, 1]} : vector<32x64xf32> to vector<32x32xf32>
    %c0_1 = arith.constant 0 : index
    %c0_2 = arith.constant 0 : index
    %5 = vector.load %arg2[%c0_1, %c0_2] : memref<32x128xf32, #tpu.memory_space<vmem>>, vector<32x32xf32>
    tpu.vector_store %arg2[%c0_1, %c0_2], %4 {strides = array<i32>} : memref<32x128xf32, #tpu.memory_space<vmem>>, vector<32x32xf32>,
    %c0_3 = arith.constant 0 : index
    %c32 = arith.constant 32 : index
    %6 = vector.load %arg2[%c0_3, %c32] : memref<32x128xf32, #tpu.memory_space<vmem>>, vector<32x32xf32>
    tpu.vector_store %arg2[%c0_3, %c32], %4 {strides = array<i32>} : memref<32x128xf32, #tpu.memory_space<vmem>>, vector<32x32xf32>,
    %7 = vector.extract_strided_slice %3 {offsets = [0, 32], sizes = [32, 32], strides = [1, 1]} : vector<32x64xf32> to vector<32x32xf32>
    %c0_4 = arith.constant 0 : index
    %c64 = arith.constant 64 : index
    %8 = vector.load %arg2[%c0_4, %c64] : memref<32x128xf32, #tpu.memory_space<vmem>>, vector<32x32xf32>
    tpu.vector_store %arg2[%c0_4, %c64], %7 {strides = array<i32>} : memref<32x128xf32, #tpu.memory_space<vmem>>, vector<32x32xf32>,
    %c0_5 = arith.constant 0 : index
    %c96 = arith.constant 96 : index
    %9 = vector.load %arg2[%c0_5, %c96] : memref<32x128xf32, #tpu.memory_space<vmem>>, vector<32x32xf32>
    tpu.vector_store %arg2[%c0_5, %c96], %7 {strides = array<i32>} : memref<32x128xf32, #tpu.memory_space<vmem>>, vector<32x32xf32>,
    return
  }
  func.func @transform_0(%arg0: i32) -> (i32, i32) {
    %c0_i32 = arith.constant 0 : i32
    %c0_i32_0 = arith.constant 0 : i32
    return %arg0, %c0_i32 : i32, i32
  }
  func.func @transform_1(%arg0: i32) -> (i32, i32) {
    %c0_i32 = arith.constant 0 : i32
    %c0_i32_0 = arith.constant 0 : i32
    return %arg0, %c0_i32 : i32, i32
  }
}

</mosaic_0001>

<bundles_post_ra>
// kernel: upsample_nearest.1
= control target key start
LH: loop header
LB: loop body
LE: loop exit
PB: predicated region body
PF: predicated region fallthrough
CT: control target
= control target key end

     0   :  { %s3682_s6 = smov 0   ;;  %s6032_s0 = inlined_call_operand.vmem [shape: f32[64,32], index: 0, kind: input, shape index: {}]   ;;  %s6033_s1 = inlined_call_operand.vmem [shape: f32[64,128], index: 1, kind: output, shape index: {}]  }
   0x1 LB: > { %s3471_s7 = sadd.s32 4294967295, %s3636_s6   ;;  %p3475_p0 = scmp.ge.s32.totalorder %s3636_s6, 1  ;;  %s3636_s6 = sphi %s3682_s6, %s11_s6  }
   0x2   : > { %p88_p1 = scmp.lt.s32.totalorder %s3636_s6, 3 }
   0x4   : > { %p89_p2 = pnand %p3475_p0, %p88_p1 }
   0x6   : > { %92 = sbr.rel (%p89_p2) target bundleno = 1495 (0x5d7), region = 24 }
   0xb   : > { %v125_v0 = vlaneseq  ;;  %s3476_s8 = sshll.u32 %s3471_s7, 2  ;;  %v3638_v34 = vmov 1983009808   ;;  %vm925_vm0 = vcmask 1047556   ;;  %s3640_s13 = smov 2   ;;  %vm3213_vm1 = vcmask 15360  }
   0xc   : > { %p109_p3 = scmp.lt.s32.totalorder %s3476_s8, 7  ;;  %v930_v35 = vunpack.c.l.s4 %v3638_v34  ;;  %s3641_s14 = smov 4   ;;  %vm3218_vm2 = vcmask 31744   ;;  %vm3223_vm3 = vcmask 48128   ;;  %vm3228_vm4 = vcmask 64512  }
   0xd   : > { %v3690_v1 = vshrl.u32 %v125_v0, 7  ;;  %s3642_s15 = smov 6   ;;  %s3643_s16 = smov 8   ;;  %vm3233_vm5 = vcmask 80896   ;;  %vm3238_vm6 = vcmask 97280   ;;  %vm3243_vm7 = vcmask 113664  }
   0xe   : > { %s6361_s8 = smov (!%p109_p3, %s3476_s8), 7  ;;  %v3813_v39 = vunpack.c.0.s8 %v930_v35  ;;  %s3644_s17 = smov 10   ;;  %vm3248_vm8 = vcmask 130048   ;;  %vm3253_vm9 = vcmask 146432   ;;  %vm3258_vm10 = vcmask 162816  }
   0xf   : > { %3525 = vset.pattern.permute.xlu2 %v3690_v1  ;;  %3524 = vset.pattern.permute.xlu0 %v3690_v1  ;;  %v3697_v2 = vadd.s32 16, %v3690_v1  ;;  %s3477_s9 = sshll.u32 %s6361_s8, 3  ;;  %v3711_v6 = vadd.s32 8, %v3690_v1  ;;  %v3715_v8 = vadd.s32 24, %v3690_v1  ;;  %s3645_s18 = smov 12   ;;  %vm3263_vm11 = vcmask 179200  }
  0x10   : > { %s112_s12 = scalar_lea.vmem %s6032_s0, %s3477_s9  ;;  %s3646_s19 = smov 14   ;;  %vm3268_vm12 = vcmask 195584   ;;  %vm3273_vm13 = vcmask 211968   ;;  %vm3278_vm14 = vcmask 228352   ;;  %vm3283_vm15 = vcmask 244736  }
  0x11   : > { %3526 = vset.pattern.permute.xlu1 %v3697_v2  ;;  %v3706_v3 = vld [vmem:[%s112_s12] sm:$0xff]  ;;  %v3723_v10 = vld [vmem:[%s112_s12 + $0x8] sm:$0xff]  ;;  %v3730_v12 = vld [vmem:[%s112_s12 + $0x10] sm:$0xff]  ;;  %s3647_s20 = smov 16   ;;  %s3648_s21 = smov 18  }
  0x12   : > { %v149_v4 = vperm.slane %v3706_v3, 1  ;;  %v124_v5 = vperm.slane %v3706_v3, 0  ;;  %v174_v7 = vperm.slane %v3706_v3, 2  ;;  %v3720_v9 = vperm.slane %v3706_v3, 7  ;;  %v3742_v15 = vld [vmem:[%s112_s12 + $0x18] sm:$0xff]  ;;  %s3649_s22 = smov 20  }
  0x13   : > { %v3726_v11 = vperm.slane %v3723_v10, 4  ;;  %v3734_v13 = vperm.slane %v3730_v12, 1  ;;  %v3738_v14 = vperm.slane %v3730_v12, 6  ;;  %v3746_v16 = vperm.slane %v3742_v15, 3  ;;  %s3650_s23 = smov 22   ;;  %s3651_s24 = smov 24  }
  0x14   : > { %v199_v17 = vperm.slane %v3706_v3, 3  ;;  %v3756_v18 = vperm.slane %v3723_v10, 0  ;;  %v3760_v19 = vperm.slane %v3723_v10, 5  ;;  %v224_v20 = vperm.slane %v3706_v3, 4  ;;  %s3652_s25 = smov 26   ;;  %s3653_s26 = smov 28  }
  0x15   : > { %v3767_v21 = vperm.slane %v3730_v12, 2  ;;  %v3771_v22 = vperm.slane %v3730_v12, 7  ;;  %v249_v23 = vperm.slane %v3706_v3, 5  ;;  %v3778_v24 = vperm.slane %v3742_v15, 4  ;;  %s3654_s27 = smov 30   ;;  %s3655_s28 = smov 32  }
  0x16   : > { %v3789_v27 = vperm.slane %v3723_v10, 1  ;;  %v274_v30 = vperm.slane %v3706_v3, 6  ;;  %v3800_v31 = vperm.slane %v3723_v10, 6  ;;  %v3809_v37 = vperm.slane %v3730_v12, 3  ;;  %s3656_s29 = smov 34   ;;  %s3657_s30 = smov 36  }
  0x17   : > { %154 = vperm.xlu2 %3525, %v149_v4   ;;  %129 = vperm.xlu0 %3524, %v124_v5   ;;  %v3826_v44 = vperm.slane %v3742_v15, 0  ;;  %v3839_v48 = vperm.slane %v3742_v15, 5  ;;  %v374_v51 = vperm.slane %v3723_v10, 2  ;;  %v3859_v52 = vperm.slane %v3723_v10, 7  ;;  %s3658_s2 = smov 38   ;;  %s3659_s3 = smov 40  }
  0x18   : > { %v3869_v55 = vperm.slane %v3730_v12, 4  ;;  %v3877_v57 = vperm.slane %v3742_v15, 1  ;;  %v3885_v59 = vperm.slane %v3742_v15, 6  ;;  %s3660_s4 = smov 42   ;;  %s3661_s5 = smov 44  }
  0x19   : > { %141 = vperm.xlu1 %3526, %v124_v5   ;;  %s3662_s7 = smov 46   ;;  %s3663_s10 = smov 48  }
  0x1a   : > { %s3664_s11 = smov 50   ;;  %s3665_s12 = smov 52  }
  0x1b   : > { %s3671_s8 = smov 64  }
  0x1f   : > { %3528 = vset.pattern.permute.xlu2 %v3711_v6  ;;  %179 = vperm.xlu0 %3524, %v174_v7  }
  0x21   : > { %3527 = vset.pattern.permute.xlu1 %v3715_v8 }
  0x27   : > { %160 = vperm.xlu2 %3528, %v149_v4   ;;  %304 = vperm.xlu0 %3524, %v3720_v9  }
  0x29   : > { %147 = vperm.xlu1 %3527, %v124_v5  }
  0x2f   : > { %3530 = vset.pattern.permute.xlu2 %v3715_v8  ;;  %429 = vperm.xlu0 %3524, %v3726_v11  }
  0x31   : > { %3529 = vset.pattern.permute.xlu1 %v3697_v2 }
  0x37   : > { %172 = vperm.xlu2 %3530, %v149_v4   ;;  %554 = vperm.xlu0 %3524, %v3734_v13  }
  0x39   : > { %166 = vperm.xlu1 %3529, %v149_v4  }
  0x3f   : > { %3532 = vset.pattern.permute.xlu2 %v3697_v2  ;;  %679 = vperm.xlu0 %3524, %v3738_v14  }
  0x41   : > { %3531 = vset.pattern.permute.xlu1 %v3711_v6 }
  0x47   : > { %191 = vperm.xlu2 %3532, %v174_v7   ;;  %804 = vperm.xlu0 %3524, %v3746_v16  }
  0x49   : > { %185 = vperm.xlu1 %3531, %v174_v7  }
  0x4f   : > { %3534 = vset.pattern.permute.xlu2 %v3690_v1  ;;  %3611 = vset.pattern.permute.xlu0 %v3711_v6 }
  0x51   : > { %3533 = vset.pattern.permute.xlu1 %v3715_v8 }
  0x57   : > { %204 = vperm.xlu2 %3534, %v199_v17   ;;  %135 = vperm.xlu0 %3611, %v124_v5  }
  0x59   : > { %197 = vperm.xlu1 %3533, %v174_v7  }
  0x5f   : > { %3536 = vset.pattern.permute.xlu2 %v3715_v8  ;;  %210 = vperm.xlu0 %3611, %v199_v17  }
  0x61   : > { %3535 = vset.pattern.permute.xlu1 %v3697_v2 }
  0x67   : > { %222 = vperm.xlu2 %3536, %v199_v17   ;;  %335 = vperm.xlu0 %3611, %v3756_v18  }
  0x69   : > { %216 = vperm.xlu1 %3535, %v199_v17   ;;  %v3639_v17 = vmov 1934713408  }
  0x6f   : > { %3538 = vset.pattern.permute.xlu2 %v3711_v6  ;;  %460 = vperm.xlu0 %3611, %v3760_v19  }
  0x71   : > { %3537 = vset.pattern.permute.xlu1 %v3690_v1  ;;  %v3781_v25 = vpop.permute.xlu2 %154 }
  0x77   : > { %235 = vperm.xlu2 %3538, %v224_v20   ;;  %585 = vperm.xlu0 %3611, %v3767_v21  }
  0x79   : > { %229 = vperm.xlu1 %3537, %v224_v20  }
  0x7f   : > { %3540 = vset.pattern.permute.xlu2 %v3690_v1  ;;  %710 = vperm.xlu0 %3611, %v3771_v22  }
  0x81   : > { %3539 = vset.pattern.permute.xlu1 %v3715_v8  ;;  %v3786_v26 = vpop.permute.xlu2 %160 }
  0x82   : > { %6129 = vst [vmem:[#allocation2_spill] sm:$0xff] %v3786_v26 }
  0x87   : > { %254 = vperm.xlu2 %3540, %v249_v23   ;;  %835 = vperm.xlu0 %3611, %v3778_v24  }
  0x89   : > { %247 = vperm.xlu1 %3539, %v224_v20   ;;  %v3791_v28 = vpop.permute.xlu0 %129 }
  0x8b   : > { %v3849_v49 = vpop.permute.xlu1 %141 }
  0x8c   : > { %6132 = vst [vmem:[#allocation5_spill] sm:$0xff] %v3849_v49 }
  0x8f   : > { %3542 = vset.pattern.permute.xlu2 %v3697_v2  ;;  %3616 = vset.pattern.permute.xlu0 %v3697_v2 }
  0x91   : > { %3541 = vset.pattern.permute.xlu1 %v3711_v6  ;;  %v3793_v29 = vpop.permute.xlu2 %172  ;;  %v3802_v32 = vpop.permute.xlu0 %179 }
  0x92   : > { %6130 = vst [vmem:[#allocation3_spill] sm:$0xff] %v3793_v29  ;;  %v924_v33 = vrot.slane %v3802_v32, 4 }
  0x94   : > { %v926_v38 = vsel %vm925_vm0, %v924_v33, %v3791_v28 }
  0x95   : > { %v3816_v40 = vperm.slane %v926_v38, %v3813_v39 }
  0x97   : > { %266 = vperm.xlu2 %3542, %v249_v23   ;;  %241 = vperm.xlu0 %3616, %v224_v20   ;;  %v975_v43 = vrot.slane %v3816_v40, 4 }
  0x99   : > { %260 = vperm.xlu1 %3541, %v249_v23   ;;  %v3900_v0 = vpop.permute.xlu0 %304 }
  0x9a   : > { %v961_v3 = vrot.slane %v3900_v0, 4 }
  0x9b   : > { %v3853_v50 = vpop.permute.xlu1 %147 }
  0x9c   : > { %6133 = vst [vmem:[#allocation6_spill] sm:$0xff] %v3853_v50  ;;  %v649_v50 = vperm.slane %v3730_v12, 5 }
  0x9f   : > { %3544 = vset.pattern.permute.xlu2 %v3711_v6  ;;  %366 = vperm.xlu0 %3616, %v3789_v27  }
  0xa1   : > { %3543 = vset.pattern.permute.xlu1 %v3690_v1  ;;  %v3806_v36 = vpop.permute.xlu2 %191 }
  0xa2   : > { %6131 = vst [vmem:[#allocation4_spill] sm:$0xff] %v3806_v36 }
  0xa7   : > { %285 = vperm.xlu2 %3544, %v274_v30   ;;  %491 = vperm.xlu0 %3616, %v3800_v31  }
  0xa9   : > { %279 = vperm.xlu1 %3543, %v274_v30  }
  0xab   : > { %v3861_v53 = vpop.permute.xlu1 %166 }
  0xac   : > { %6134 = vst [vmem:[#allocation7_spill] sm:$0xff] %v3861_v53 }
  0xaf   : > { %3546 = vset.pattern.permute.xlu2 %v3715_v8  ;;  %616 = vperm.xlu0 %3616, %v3809_v37  }
  0xb1   : > { %v3820_v41 = vpop.permute.xlu2 %204  ;;  %3545 = vset.pattern.permute.xlu1 %v3697_v2 }
  0xb2   : > { %v937_v42 = vrot.slane %v3820_v41, 4 }
  0xb4   : > { %v938_v45 = vsel %vm925_vm0, %v937_v42, %v3781_v25 }
  0xb5   : > { %v3831_v46 = vperm.slane %v938_v45, %v3813_v39 }
  0xb7   : > { %297 = vperm.xlu2 %3546, %v274_v30   ;;  %741 = vperm.xlu0 %3616, %v3826_v44   ;;  %v3836_v47 = vsel %vm925_vm0, %v3831_v46, %v975_v43 }
  0xb9   : > { %291 = vperm.xlu1 %3545, %v274_v30  }
  0xbb   : > { %v3866_v54 = vpop.permute.xlu1 %185 }
  0xbc   : > { %6135 = vst [vmem:[#allocation8_spill] sm:$0xff] %v3866_v54 }
  0xbf   : > { %3548 = vset.pattern.permute.xlu2 %v3697_v2  ;;  %866 = vperm.xlu0 %3616, %v3839_v48  }
  0xc1   : > { %3547 = vset.pattern.permute.xlu1 %v3711_v6  ;;  %v3890_v60 = vpop.permute.xlu2 %222 }
  0xc2   : > { %6138 = vst [vmem:[#allocation11_spill] sm:$0xff] %v3890_v60 }
  0xc7   : > { %316 = vperm.xlu2 %3548, %v3720_v9   ;;  %3621 = vset.pattern.permute.xlu0 %v3715_v8 }
  0xc9   : > { %310 = vperm.xlu1 %3547, %v3720_v9  }
  0xcb   : > { %v3874_v56 = vpop.permute.xlu1 %197 }
  0xcc   : > { %6136 = vst [vmem:[#allocation9_spill] sm:$0xff] %v3874_v56 }
  0xcf   : > { %3550 = vset.pattern.permute.xlu2 %v3690_v1  ;;  %272 = vperm.xlu0 %3621, %v249_v23  }
  0xd1   : > { %3549 = vset.pattern.permute.xlu1 %v3715_v8  ;;  %v3895_v62 = vpop.permute.xlu2 %235 }
  0xd2   : > { %6139 = vst [vmem:[#allocation12_spill] sm:$0xff] %v3895_v62 }
  0xd7   : > { %329 = vperm.xlu2 %3550, %v3756_v18   ;;  %397 = vperm.xlu0 %3621, %v374_v51  }
  0xd9   : > { %322 = vperm.xlu1 %3549, %v3720_v9   ;;  %v973_v9 = vrot.slane %v3831_v46, 4 }
  0xdb   : > { %v3882_v58 = vpop.permute.xlu1 %216 }
  0xdc   : > { %6137 = vst [vmem:[#allocation10_spill] sm:$0xff] %v3882_v58 }
  0xdf   : > { %3552 = vset.pattern.permute.xlu2 %v3715_v8  ;;  %522 = vperm.xlu0 %3621, %v3859_v52  }
  0xe1   : > { %3551 = vset.pattern.permute.xlu1 %v3697_v2  ;;  %v3906_v5 = vpop.permute.xlu2 %254 }
  0xe2   : > { %v962_v7 = vsel %vm925_vm0, %v961_v3, %v3906_v5  ;;  %v399_v3 = vperm.slane %v3723_v10, 3  ;;  %v524_v10 = vperm.slane %v3730_v12, 0 }
  0xe3   : > { %v968_v20 = vperm.slane %v962_v7, %v3813_v39 }
  0xe5   : > { %v997_v34 = vrot.slane %v968_v20, 4 }
  0xe7   : > { %347 = vperm.xlu2 %3552, %v3756_v18   ;;  %647 = vperm.xlu0 %3621, %v3869_v55  }
  0xe9   : > { %341 = vperm.xlu1 %3551, %v3756_v18   ;;  %v978_v18 = vunpack.c.l.s4 %v3639_v17 }
  0xeb   : > { %v3892_v61 = vpop.permute.xlu1 %229  ;;  %v3917_v33 = vunpack.c.0.s8 %v978_v18 }
  0xed   : > { %v984_v43 = vperm.slane %v3836_v47, %v3917_v33 }
  0xef   : > { %3554 = vset.pattern.permute.xlu2 %v3711_v6  ;;  %772 = vperm.xlu0 %3621, %v3877_v57   ;;  %v1027_v47 = vrot.slane %v984_v43, 4 }
  0xf1   : > { %3553 = vset.pattern.permute.xlu1 %v3690_v1 }
  0xf7   : > { %360 = vperm.xlu2 %3554, %v3789_v27   ;;  %897 = vperm.xlu0 %3621, %v3885_v59  }
  0xf9   : > { %354 = vperm.xlu1 %3553, %v3789_v27  }
  0xfb   : > { %v3897_v63 = vpop.permute.xlu1 %247 }
  0xfc   : > { %6140 = vst [vmem:[#allocation13_spill] sm:$0xff] %v3897_v63 }
  0xff   : > { %3556 = vset.pattern.permute.xlu2 %v3690_v1 }
 0x101   : > { %3555 = vset.pattern.permute.xlu1 %v3715_v8 }
 0x107   : > { %379 = vperm.xlu2 %3556, %v374_v51  }
 0x109   : > { %372 = vperm.xlu1 %3555, %v3789_v27   ;;  %v974_v27 = vsel %vm925_vm0, %v973_v9, %v3816_v40 }
 0x10a   : > { %v3922_v38 = vperm.slane %v974_v27, %v3917_v33 }
 0x10b   : > { %v3904_v4 = vpop.permute.xlu1 %260 }
 0x10c   : > { %6141 = vst [vmem:[#allocation14_spill] sm:$0xff] %v3904_v4 }
 0x10d   : > { %6142 = vst [vmem:[#allocation15_spill] sm:$0xff] %v3922_v38 }
 0x10f   : > { %3558 = vset.pattern.permute.xlu2 %v3697_v2 }
 0x111   : > { %3557 = vset.pattern.permute.xlu1 %v3711_v6 }
 0x117   : > { %391 = vperm.xlu2 %3558, %v374_v51  }
 0x119   : > { %385 = vperm.xlu1 %3557, %v374_v51   ;;  %v1023_v51 = vrot.slane %v3922_v38, 4 }
 0x11b   : > { %v3912_v23 = vpop.permute.xlu1 %279 }
 0x11c   : > { %v949_v30 = vrot.slane %v3912_v23, 4 }
 0x11e   : > { %v950_v35 = vsel %vm925_vm0, %v949_v30, %v3892_v61 }
 0x11f   : > { %v956_v42 = vperm.slane %v950_v35, %v3813_v39  ;;  %3560 = vset.pattern.permute.xlu2 %v3711_v6 }
 0x121   : > { %v999_v45 = vrot.slane %v956_v42, 4  ;;  %3559 = vset.pattern.permute.xlu1 %v3690_v1  ;;  %v998_v40 = vsel %vm925_vm0, %v997_v34, %v956_v42 }
 0x122   : > { %v3931_v46 = vperm.slane %v998_v40, %v3917_v33 }
 0x123   : > { %v1000_v7 = vsel %vm925_vm0, %v968_v20, %v999_v45 }
 0x124   : > { %6143 = vst [vmem:[#allocation16_spill] sm:$0xff] %v3931_v46  ;;  %v1024_v9 = vsel %vm925_vm0, %v3931_v46, %v1023_v51  ;;  %v1008_v17 = vperm.slane %v1000_v7, %v3917_v33 }
 0x125   : > { %2721 = vrot.lane.b32.xlu0 %v1024_v9, %s3640_s13 }
 0x126   : > { %v1025_v18 = vrot.slane %v1008_v17, 4  ;;  %v3941_v27 = vsel %vm925_vm0, %v1008_v17, %v1027_v47 }
 0x127   : > { %410 = vperm.xlu2 %3560, %v399_v3  }
 0x128   : > { %v3944_v30 = vsel %vm925_vm0, %v1025_v18, %v984_v43 }
 0x129   : > { %404 = vperm.xlu1 %3559, %v399_v3  }
 0x12b   : > { %v3991_v34 = vpop.permute.xlu1 %291 }
 0x12c   : > { %6148 = vst [vmem:[#allocation21_spill] sm:$0xff] %v3991_v34 }
 0x12f   : > { %3562 = vset.pattern.permute.xlu2 %v3715_v8 }
 0x131   : > { %3561 = vset.pattern.permute.xlu1 %v3697_v2 }
 0x137   : > { %422 = vperm.xlu2 %3562, %v399_v3  }
 0x139   : > { %416 = vperm.xlu1 %3561, %v399_v3  }
 0x13b   : > { %v3995_v35 = vpop.permute.xlu1 %310 }
 0x13c   : > { %6149 = vst [vmem:[#allocation22_spill] sm:$0xff] %v3995_v35 }
 0x13f   : > { %3564 = vset.pattern.permute.xlu2 %v3697_v2 }
 0x141   : > { %3563 = vset.pattern.permute.xlu1 %v3711_v6 }
 0x147   : > { %441 = vperm.xlu2 %3564, %v3726_v11  }
 0x149   : > { %435 = vperm.xlu1 %3563, %v3726_v11  }
 0x14b   : > { %v4001_v43 = vpop.permute.xlu1 %322 }
 0x14c   : > { %6151 = vst [vmem:[#allocation24_spill] sm:$0xff] %v4001_v43 }
 0x14f   : > { %3566 = vset.pattern.permute.xlu2 %v3690_v1 }
 0x151   : > { %3565 = vset.pattern.permute.xlu1 %v3715_v8 }
 0x157   : > { %454 = vperm.xlu2 %3566, %v3760_v19  }
 0x159   : > { %447 = vperm.xlu1 %3565, %v3726_v11   ;;  %v3975_v11 = vpop.permute.xlu2 %266 }
 0x15a   : > { %6144 = vst [vmem:[#allocation17_spill] sm:$0xff] %v3975_v11 }
 0x15b   : > { %v4007_v40 = vpop.permute.xlu1 %341 }
 0x15c   : > { %6153 = vst [vmem:[#allocation26_spill] sm:$0xff] %v4007_v40 }
 0x15f   : > { %3568 = vset.pattern.permute.xlu2 %v3715_v8 }
 0x161   : > { %3567 = vset.pattern.permute.xlu1 %v3697_v2 }
 0x167   : > { %472 = vperm.xlu2 %3568, %v3760_v19  }
 0x169   : > { %466 = vperm.xlu1 %3567, %v3760_v19   ;;  %v3977_v19 = vpop.permute.xlu2 %285 }
 0x16a   : > { %6145 = vst [vmem:[#allocation18_spill] sm:$0xff] %v3977_v19 }
 0x16b   : > { %v4013_v3 = vpop.permute.xlu1 %354 }
 0x16f   : > { %3570 = vset.pattern.permute.xlu2 %v3711_v6 }
 0x171   : > { %3569 = vset.pattern.permute.xlu1 %v3690_v1 }
 0x177   : > { %485 = vperm.xlu2 %3570, %v3800_v31  }
 0x179   : > { %479 = vperm.xlu1 %3569, %v3800_v31  }
 0x17b   : > { %v4019_v7 = vpop.permute.xlu1 %372 }
 0x17c   : > { %6155 = vst [vmem:[#allocation28_spill] sm:$0xff] %v4019_v7 }
 0x17f   : > { %3572 = vset.pattern.permute.xlu2 %v3690_v1 }
 0x181   : > { %3571 = vset.pattern.permute.xlu1 %v3715_v8 }
 0x187   : > { %504 = vperm.xlu2 %3572, %v3859_v52  }
 0x189   : > { %497 = vperm.xlu1 %3571, %v3800_v31   ;;  %v3981_v31 = vpop.permute.xlu2 %297 }
 0x18a   : > { %6146 = vst [vmem:[#allocation19_spill] sm:$0xff] %v3981_v31 }
 0x18b   : > { %v4025_v17 = vpop.permute.xlu1 %385 }
 0x18c   : > { %6157 = vst [vmem:[#allocation30_spill] sm:$0xff] %v4025_v17 }
 0x18f   : > { %3574 = vset.pattern.permute.xlu2 %v3697_v2 }
 0x191   : > { %3573 = vset.pattern.permute.xlu1 %v3711_v6 }
 0x197   : > { %516 = vperm.xlu2 %3574, %v3859_v52  }
 0x199   : > { %510 = vperm.xlu1 %3573, %v3859_v52   ;;  %v3984_v52 = vpop.permute.xlu2 %316 }
 0x19a   : > { %6147 = vst [vmem:[#allocation20_spill] sm:$0xff] %v3984_v52 }
 0x19b   : > { %v4031_v47 = vpop.permute.xlu1 %404 }
 0x19f   : > { %3576 = vset.pattern.permute.xlu2 %v3711_v6 }
 0x1a1   : > { %3575 = vset.pattern.permute.xlu1 %v3690_v1  ;;  %v3988_v20 = vpop.permute.xlu2 %329 }
 0x1a7   : > { %535 = vperm.xlu2 %3576, %v524_v10  }
 0x1a9   : > { %529 = vperm.xlu1 %3575, %v524_v10   ;;  %v3997_v42 = vpop.permute.xlu2 %347 }
 0x1aa   : > { %6150 = vst [vmem:[#allocation23_spill] sm:$0xff] %v3997_v42 }
 0x1ab   : > { %v4035_v18 = vpop.permute.xlu1 %416 }
 0x1ac   : > { %6159 = vst [vmem:[#allocation32_spill] sm:$0xff] %v4035_v18 }
 0x1af   : > { %3578 = vset.pattern.permute.xlu2 %v3715_v8 }
 0x1b1   : > { %3577 = vset.pattern.permute.xlu1 %v3697_v2  ;;  %v4003_v45 = vpop.permute.xlu2 %360 }
 0x1b2   : > { %6152 = vst [vmem:[#allocation25_spill] sm:$0xff] %v4003_v45 }
 0x1b7   : > { %547 = vperm.xlu2 %3578, %v524_v10  }
 0x1b9   : > { %541 = vperm.xlu1 %3577, %v524_v10   ;;  %v4009_v51 = vpop.permute.xlu2 %379 }
 0x1bb   : > { %v4041_v42 = vpop.permute.xlu1 %435 }
 0x1bc   : > { %6161 = vst [vmem:[#allocation34_spill] sm:$0xff] %v4041_v42 }
 0x1bf   : > { %3580 = vset.pattern.permute.xlu2 %v3697_v2 }
 0x1c1   : > { %3579 = vset.pattern.permute.xlu1 %v3711_v6 }
 0x1c7   : > { %566 = vperm.xlu2 %3580, %v3734_v13  }
 0x1c9   : > { %560 = vperm.xlu1 %3579, %v3734_v13  }
 0x1cf   : > { %3582 = vset.pattern.permute.xlu2 %v3690_v1 }
 0x1d1   : > { %3581 = vset.pattern.permute.xlu1 %v3715_v8 }
 0x1d7   : > { %579 = vperm.xlu2 %3582, %v3767_v21  }
 0x1d9   : > { %572 = vperm.xlu1 %3581, %v3734_v13   ;;  %v4016_v13 = vpop.permute.xlu2 %391 }
 0x1da   : > { %6154 = vst [vmem:[#allocation27_spill] sm:$0xff] %v4016_v13 }
 0x1df   : > { %3584 = vset.pattern.permute.xlu2 %v3715_v8 }
 0x1e1   : > { %3583 = vset.pattern.permute.xlu1 %v3697_v2  ;;  %v4022_v9 = vpop.permute.xlu2 %410 }
 0x1e2   : > { %6156 = vst [vmem:[#allocation29_spill] sm:$0xff] %v4022_v9 }
 0x1e7   : > { %597 = vperm.xlu2 %3584, %v3767_v21  }
 0x1e9   : > { %591 = vperm.xlu1 %3583, %v3767_v21   ;;  %v4029_v21 = vpop.permute.xlu2 %422 }
 0x1ea   : > { %6158 = vst [vmem:[#allocation31_spill] sm:$0xff] %v4029_v21  ;;  %v4047_v21 = vpop.permute.xlu1 %447 }
 0x1eb   : > { %6162 = vst [vmem:[#allocation35_spill] sm:$0xff] %v4047_v21 }
 0x1ef   : > { %3586 = vset.pattern.permute.xlu2 %v3711_v6 }
 0x1f1   : > { %3585 = vset.pattern.permute.xlu1 %v3690_v1  ;;  %v4037_v10 = vpop.permute.xlu2 %441 }
 0x1f2   : > { %6160 = vst [vmem:[#allocation33_spill] sm:$0xff] %v4037_v10 }
 0x1f7   : > { %610 = vperm.xlu2 %3586, %v3809_v37  }
 0x1f9   : > { %604 = vperm.xlu1 %3585, %v3809_v37   ;;  %v4043_v7 = vpop.permute.xlu2 %454 }
 0x1ff   : > { %3588 = vset.pattern.permute.xlu2 %v3690_v1 }
 0x201   : > { %3587 = vset.pattern.permute.xlu1 %v3715_v8  ;;  %v4049_v63 = vpop.permute.xlu2 %472 }
 0x202   : > { %6163 = vst [vmem:[#allocation36_spill] sm:$0xff] %v4049_v63 }
 0x207   : > { %629 = vperm.xlu2 %3588, %v3869_v55  }
 0x209   : > { %622 = vperm.xlu1 %3587, %v3809_v37   ;;  %v4053_v37 = vpop.permute.xlu1 %466  ;;  %v4056_v31 = vpop.permute.xlu2 %485 }
 0x20a   : > { %6164 = vst [vmem:[#allocation37_spill] sm:$0xff] %v4053_v37 }
 0x20b   : > { %6165 = vst [vmem:[#allocation38_spill] sm:$0xff] %v4056_v31 }
 0x20f   : > { %3590 = vset.pattern.permute.xlu2 %v3697_v2 }
 0x211   : > { %3589 = vset.pattern.permute.xlu1 %v3711_v6  ;;  %v4058_v56 = vpop.permute.xlu1 %479 }
 0x217   : > { %641 = vperm.xlu2 %3590, %v3869_v55  }
 0x219   : > { %635 = vperm.xlu1 %3589, %v3869_v55   ;;  %v4061_v55 = vpop.permute.xlu2 %504  ;;  %v4064_v63 = vpop.permute.xlu1 %497 }
 0x21a   : > { %6166 = vst [vmem:[#allocation39_spill] sm:$0xff] %v4064_v63 }
 0x21f   : > { %3592 = vset.pattern.permute.xlu2 %v3711_v6 }
 0x221   : > { %3591 = vset.pattern.permute.xlu1 %v3690_v1  ;;  %v4066_v21 = vpop.permute.xlu2 %516  ;;  %v4068_v29 = vpop.permute.xlu1 %510 }
 0x222   : > { %6167 = vst [vmem:[#allocation40_spill] sm:$0xff] %v4066_v21 }
 0x223   : > { %6168 = vst [vmem:[#allocation41_spill] sm:$0xff] %v4068_v29 }
 0x227   : > { %660 = vperm.xlu2 %3592, %v649_v50  }
 0x229   : > { %654 = vperm.xlu1 %3591, %v649_v50   ;;  %v4072_v12 = vpop.permute.xlu2 %535  ;;  %v4074_v43 = vpop.permute.xlu1 %529 }
 0x22a   : > { %6169 = vst [vmem:[#allocation42_spill] sm:$0xff] %v4072_v12 }
 0x22f   : > { %3594 = vset.pattern.permute.xlu2 %v3715_v8 }
 0x231   : > { %3593 = vset.pattern.permute.xlu1 %v3697_v2  ;;  %v4078_v60 = vpop.permute.xlu1 %541  ;;  %v4080_v63 = vpop.permute.xlu2 %547 }
 0x232   : > { %6170 = vst [vmem:[#allocation43_spill] sm:$0xff] %v4078_v60 }
 0x233   : > { %6171 = vst [vmem:[#allocation44_spill] sm:$0xff] %v4080_v63  ;;  %v4096_v63 = vpop.permute.xlu0 %429 }
 0x237   : > { %672 = vperm.xlu2 %3594, %v649_v50  }
 0x239   : > { %666 = vperm.xlu1 %3593, %v649_v50   ;;  %v4086_v38 = vpop.permute.xlu2 %566 }
 0x23a   : > { %6173 = vst [vmem:[#allocation46_spill] sm:$0xff] %v4086_v38 }
 0x23b   : > { %v4084_v50 = vpop.permute.xlu1 %560  ;;  %v4111_v52 = vpop.permute.xlu0 %554 }
 0x23c   : > { %6172 = vst [vmem:[#allocation45_spill] sm:$0xff] %v4084_v50 }
 0x23f   : > { %3596 = vset.pattern.permute.xlu2 %v3697_v2 }
 0x241   : > { %3595 = vset.pattern.permute.xlu1 %v3711_v6  ;;  %v4093_v46 = vpop.permute.xlu2 %579 }
 0x242   : > { %v1149_v11 = vrot.slane %v4093_v46, 4 }
 0x243   : > { %v4152_v21 = vpop.permute.xlu0 %679 }
 0x244   : > { %v1150_v60 = vsel %vm925_vm0, %v1149_v11, %v4074_v43  ;;  %v1173_v34 = vrot.slane %v4152_v21, 4 }
 0x247   : > { %691 = vperm.xlu2 %3596, %v3738_v14  }
 0x249   : > { %685 = vperm.xlu1 %3595, %v3738_v14   ;;  %v4113_v37 = vpop.permute.xlu2 %597 }
 0x24a   : > { %6176 = vst [vmem:[#allocation49_spill] sm:$0xff] %v4113_v37 }
 0x24b   : > { %v4090_v49 = vpop.permute.xlu1 %572 }
 0x24c   : > { %6174 = vst [vmem:[#allocation47_spill] sm:$0xff] %v4090_v49 }
 0x24f   : > { %3598 = vset.pattern.permute.xlu2 %v3690_v1 }
 0x251   : > { %3597 = vset.pattern.permute.xlu1 %v3715_v8 }
 0x257   : > { %704 = vperm.xlu2 %3598, %v3771_v22  }
 0x259   : > { %697 = vperm.xlu1 %3597, %v3738_v14   ;;  %v4106_v14 = vperm.slane %v1150_v60, %v3813_v39  ;;  %v4125_v60 = vpop.permute.xlu2 %610 }
 0x25a   : > { %6177 = vst [vmem:[#allocation50_spill] sm:$0xff] %v4125_v60 }
 0x25b   : > { %v4098_v10 = vpop.permute.xlu1 %591  ;;  %v1199_v13 = vrot.slane %v4106_v14, 4 }
 0x25c   : > { %6175 = vst [vmem:[#allocation48_spill] sm:$0xff] %v4098_v10 }
 0x25f   : > { %3600 = vset.pattern.permute.xlu2 %v3715_v8 }
 0x261   : > { %3599 = vset.pattern.permute.xlu1 %v3697_v2 }
 0x267   : > { %722 = vperm.xlu2 %3600, %v3771_v22  }
 0x269   : > { %716 = vperm.xlu1 %3599, %v3771_v22  }
 0x26b   : > { %v4108_v49 = vpop.permute.xlu1 %604 }
 0x26c   : > { %v1161_v40 = vrot.slane %v4108_v49, 4 }
 0x26e   : > { %v1162_v10 = vsel %vm925_vm0, %v1161_v40, %v4111_v52  ;;  %v4130_v40 = vpop.permute.xlu2 %629 }
 0x26f   : > { %v4119_v11 = vperm.slane %v1162_v10, %v3813_v39  ;;  %3602 = vset.pattern.permute.xlu2 %v3711_v6 }
 0x271   : > { %3601 = vset.pattern.permute.xlu1 %v3690_v1  ;;  %v1200_v22 = vsel %vm925_vm0, %v4119_v11, %v1199_v13 }
 0x272   : > { %v1208_v58 = vperm.slane %v1200_v22, %v3917_v33  ;;  %v4222_v22 = vpop.permute.xlu0 %804 }
 0x276   : > { %v4135_v10 = vpop.permute.xlu2 %641 }
 0x277   : > { %735 = vperm.xlu2 %3602, %v3826_v44   ;;  %6178 = vst [vmem:[#allocation51_spill] sm:$0xff] %v4135_v10 }
 0x279   : > { %729 = vperm.xlu1 %3601, %v3826_v44  }
 0x27b   : > { %v4147_v38 = vpop.permute.xlu1 %622 }
 0x27c   : > { %6181 = vst [vmem:[#allocation54_spill] sm:$0xff] %v4147_v38 }
 0x27f   : > { %3604 = vset.pattern.permute.xlu2 %v3690_v1 }
 0x281   : > { %3603 = vset.pattern.permute.xlu1 %v3715_v8  ;;  %v4139_v13 = vpop.permute.xlu2 %660 }
 0x282   : > { %6179 = vst [vmem:[#allocation52_spill] sm:$0xff] %v4139_v13  ;;  %v1251_v13 = vrot.slane %v1208_v58, 4 }
 0x287   : > { %754 = vperm.xlu2 %3604, %v3877_v57  }
 0x289   : > { %747 = vperm.xlu1 %3603, %v3826_v44   ;;  %v774_v44 = vperm.slane %v3742_v15, 2 }
 0x28b   : > { %v4155_v18 = vpop.permute.xlu1 %635 }
 0x28c   : > { %6183 = vst [vmem:[#allocation56_spill] sm:$0xff] %v4155_v18 }
 0x28f   : > { %3606 = vset.pattern.permute.xlu2 %v3697_v2 }
 0x291   : > { %3605 = vset.pattern.permute.xlu1 %v3711_v6  ;;  %v4143_v37 = vpop.permute.xlu2 %672 }
 0x292   : > { %6180 = vst [vmem:[#allocation53_spill] sm:$0xff] %v4143_v37 }
 0x297   : > { %766 = vperm.xlu2 %3606, %v3877_v57  }
 0x299   : > { %760 = vperm.xlu1 %3605, %v3877_v57   ;;  %v1174_v57 = vsel %vm925_vm0, %v1173_v34, %v4130_v40 }
 0x29a   : > { %v4161_v37 = vperm.slane %v1174_v57, %v3813_v39 }
 0x29b   : > { %v4167_v53 = vpop.permute.xlu1 %654 }
 0x29c   : > { %v1223_v34 = vrot.slane %v4161_v37, 4 }
 0x29f   : > { %3608 = vset.pattern.permute.xlu2 %v3711_v6 }
 0x2a1   : > { %3607 = vset.pattern.permute.xlu1 %v3690_v1  ;;  %v4150_v10 = vpop.permute.xlu2 %691 }
 0x2a2   : > { %6182 = vst [vmem:[#allocation55_spill] sm:$0xff] %v4150_v10 }
 0x2a7   : > { %785 = vperm.xlu2 %3608, %v774_v44  }
 0x2a9   : > { %779 = vperm.xlu1 %3607, %v774_v44  }
 0x2af   : > { %3610 = vset.pattern.permute.xlu2 %v3715_v8 }
 0x2b1   : > { %v4163_v38 = vpop.permute.xlu2 %704  ;;  %3609 = vset.pattern.permute.xlu1 %v3697_v2 }
 0x2b2   : > { %v1185_v10 = vrot.slane %v4163_v38, 4 }
 0x2b4   : > { %v1186_v36 = vsel %vm925_vm0, %v1185_v10, %v4167_v53 }
 0x2b5   : > { %v4174_v12 = vperm.slane %v1186_v36, %v3813_v39  ;;  %v4213_v36 = vpop.permute.xlu1 %666 }
 0x2b6   : > { %6186 = vst [vmem:[#allocation59_spill] sm:$0xff] %v4213_v36  ;;  %v1197_v36 = vrot.slane %v4119_v11, 4 }
 0x2b7   : > { %797 = vperm.xlu2 %3610, %v774_v44   ;;  %v1224_v57 = vsel %vm925_vm0, %v4174_v12, %v1223_v34  ;;  %v1037_v34 = vrot.slane %v4009_v51, 4 }
 0x2b8   : > { %v1232_v50 = vperm.slane %v1224_v57, %v3917_v33 }
 0x2b9   : > { %791 = vperm.xlu1 %3609, %v774_v44  }
 0x2ba   : > { %v4180_v18 = vsel %vm925_vm0, %v1232_v50, %v1251_v13  ;;  %v1249_v60 = vrot.slane %v1232_v50, 4  ;;  %v899_v50 = vperm.slane %v3742_v15, 7 }
 0x2bc   : > { %v4183_v10 = vsel %vm925_vm0, %v1249_v60, %v1208_v58  ;;  %v1049_v60 = vrot.slane %v4031_v47, 4 }
 0x2bd   : > { %v4217_v58 = vpop.permute.xlu1 %685 }
 0x2be   : > { %6187 = vst [vmem:[#allocation60_spill] sm:$0xff] %v4217_v58 }
 0x2bf   : > { %3613 = vset.pattern.permute.xlu2 %v3697_v2 }
 0x2c1   : > { %3612 = vset.pattern.permute.xlu1 %v3711_v6 }
 0x2c7   : > { %816 = vperm.xlu2 %3613, %v3746_v16  }
 0x2c9   : > { %810 = vperm.xlu1 %3612, %v3746_v16  }
 0x2cb   : > { %v4226_v13 = vpop.permute.xlu1 %697 }
 0x2cc   : > { %6188 = vst [vmem:[#allocation61_spill] sm:$0xff] %v4226_v13  ;;  %v4240_v13 = vpop.permute.xlu0 %135 }
 0x2cd   : > { %6190 = vst [vmem:[#allocation63_spill] sm:$0xff] %v4240_v13 }
 0x2cf   : > { %3615 = vset.pattern.permute.xlu2 %v3690_v1 }
 0x2d1   : > { %3614 = vset.pattern.permute.xlu1 %v3715_v8 }
 0x2d7   : > { %829 = vperm.xlu2 %3615, %v3778_v24  }
 0x2d9   : > { %822 = vperm.xlu1 %3614, %v3746_v16   ;;  %v4206_v16 = vpop.permute.xlu2 %722 }
 0x2da   : > { %6184 = vst [vmem:[#allocation57_spill] sm:$0xff] %v4206_v16 }
 0x2df   : > { %3618 = vset.pattern.permute.xlu2 %v3715_v8 }
 0x2e1   : > { %3617 = vset.pattern.permute.xlu1 %v3697_v2 }
 0x2e7   : > { %847 = vperm.xlu2 %3618, %v3778_v24  }
 0x2e9   : > { %841 = vperm.xlu1 %3617, %v3778_v24   ;;  %v4210_v24 = vpop.permute.xlu2 %735 }
 0x2ea   : > { %6185 = vst [vmem:[#allocation58_spill] sm:$0xff] %v4210_v24 }
 0x2ef   : > { %3620 = vset.pattern.permute.xlu2 %v3711_v6 }
 0x2f1   : > { %3619 = vset.pattern.permute.xlu1 %v3690_v1 }
 0x2f7   : > { %860 = vperm.xlu2 %3620, %v3839_v48  }
 0x2f9   : > { %854 = vperm.xlu1 %3619, %v3839_v48  }
 0x2ff   : > { %3623 = vset.pattern.permute.xlu2 %v3690_v1 }
 0x301   : > { %3622 = vset.pattern.permute.xlu1 %v3715_v8 }
 0x307   : > { %879 = vperm.xlu2 %3623, %v3885_v59  }
 0x309   : > { %872 = vperm.xlu1 %3622, %v3839_v48   ;;  %v4219_v48 = vpop.permute.xlu2 %754 }
 0x30f   : > { %3625 = vset.pattern.permute.xlu2 %v3697_v2 }
 0x311   : > { %3624 = vset.pattern.permute.xlu1 %v3711_v6  ;;  %v4231_v44 = vpop.permute.xlu2 %766 }
 0x312   : > { %6189 = vst [vmem:[#allocation62_spill] sm:$0xff] %v4231_v44  ;;  %v1038_v44 = vsel %vm925_vm0, %v1037_v34, %v3988_v20 }
 0x317   : > { %891 = vperm.xlu2 %3625, %v3885_v59  }
 0x319   : > { %885 = vperm.xlu1 %3624, %v3885_v59   ;;  %v1073_v59 = vrot.slane %v4061_v55, 4  ;;  %v4254_v11 = vpop.permute.xlu2 %785 }
 0x31a   : > { %6192 = vst [vmem:[#allocation65_spill] sm:$0xff] %v4254_v11 }
 0x31b   : > { %v1074_v15 = vsel %vm925_vm0, %v1073_v59, %v4043_v7 }
 0x31f   : > { %3627 = vset.pattern.permute.xlu2 %v3711_v6  ;;  %v1050_v6 = vsel %vm925_vm0, %v1049_v60, %v4013_v3  ;;  %v1080_v60 = vperm.slane %v1074_v15, %v3813_v39  ;;  %v1198_v15 = vsel %vm925_vm0, %v1197_v36, %v4106_v14  ;;  %v4269_v36 = vpop.permute.xlu0 %210 }
 0x320   : > { %v1056_v57 = vperm.slane %v1050_v6, %v3813_v39  ;;  %v1221_v6 = vrot.slane %v4174_v12, 4  ;;  %6193 = vst [vmem:[#allocation66_spill] sm:$0xff] %v4269_v36  ;;  %v1273_v36 = vrot.slane %v4222_v22, 4 }
 0x321   : > { %3626 = vset.pattern.permute.xlu1 %v3690_v1  ;;  %v1061_v1 = vrot.slane %v4058_v56, 4  ;;  %v1109_v58 = vrot.slane %v1080_v60, 4 }
 0x322   : > { %v1085_v24 = vrot.slane %v1056_v57, 4 }
 0x323   : > { %v1062_v16 = vsel %vm925_vm0, %v1061_v1, %v4096_v63  ;;  %v1044_v1 = vperm.slane %v1038_v44, %v3813_v39 }
 0x324   : > { %v1068_v59 = vperm.slane %v1062_v16, %v3813_v39  ;;  %v4260_v16 = vperm.slane %v1198_v15, %v3917_v33 }
 0x325   : > { %v1086_v34 = vsel %vm925_vm0, %v1085_v24, %v1044_v1  ;;  %v1087_v15 = vrot.slane %v1044_v1, 4 }
 0x326   : > { %v1111_v62 = vrot.slane %v1068_v59, 4  ;;  %v1110_v12 = vsel %vm925_vm0, %v1109_v58, %v1068_v59  ;;  %v4267_v14 = vperm.slane %v1086_v34, %v3917_v33  ;;  %v1247_v24 = vrot.slane %v4260_v16, 4 }
 0x327   : > { %910 = vperm.xlu2 %3627, %v899_v50  }
 0x329   : > { %904 = vperm.xlu1 %3626, %v899_v50  }
 0x32f   : > { %3629 = vset.pattern.permute.xlu2 %v3715_v8  ;;  %v4249_v8 = vpop.permute.xlu1 %716 }
 0x330   : > { %6191 = vst [vmem:[#allocation64_spill] sm:$0xff] %v4249_v8 }
 0x331   : > { %3628 = vset.pattern.permute.xlu1 %v3697_v2  ;;  %v1222_v2 = vsel %vm925_vm0, %v1221_v6, %v4161_v37  ;;  %v1112_v37 = vsel %vm925_vm0, %v1080_v60, %v1111_v62  ;;  %v4276_v6 = vperm.slane %v1110_v12, %v3917_v33  ;;  %v4287_v62 = vpop.permute.xlu2 %797  ;;  %v1088_v60 = vsel %vm925_vm0, %v1056_v57, %v1087_v15  ;;  %v4292_v12 = vpop.permute.xlu0 %335 }
 0x332   : > { %v4264_v44 = vperm.slane %v1222_v2, %v3917_v33  ;;  %v4282_v59 = vperm.slane %v1112_v37, %v3917_v33  ;;  %6194 = vst [vmem:[#allocation67_spill] sm:$0xff] %v4287_v62  ;;  %v4297_v37 = vperm.slane %v1088_v60, %v3917_v33 }
 0x333   : > { %6195 = vst [vmem:[#allocation68_spill] sm:$0xff] %v4292_v12 }
 0x334   : > { %v1248_v58 = vsel %vm925_vm0, %v4264_v44, %v1247_v24  ;;  %v1137_v34 = vrot.slane %v4282_v59, 4 }
 0x336   : > { %v1138_v1 = vsel %vm925_vm0, %v1137_v34, %v4297_v37 }
 0x337   : > { %922 = vperm.xlu2 %3629, %v899_v50   ;;  %v4271_v8 = vpop.permute.xlu1 %729 }
 0x339   : > { %916 = vperm.xlu1 %3628, %v899_v50   ;;  %v1135_v50 = vrot.slane %v4267_v14, 4 }
 0x33b   : > { %v1136_v2 = vsel %vm925_vm0, %v4276_v6, %v1135_v50  ;;  %v4308_v50 = vpop.permute.xlu0 %460 }
 0x33c   : > { %6199 = vst [vmem:[#allocation72_spill] sm:$0xff] %v4308_v50 }
 0x33f   : > { %2725 = vrot.lane.b32.xlu2 %v1248_v58, %s3640_s13  ;;  %v4294_v24 = vpop.permute.xlu1 %747  ;;  %v4302_v58 = vpop.permute.xlu2 %816 }
 0x340   : > { %6196 = vst [vmem:[#allocation69_spill] sm:$0xff] %v4294_v24 }
 0x341   : > { %2723 = vrot.lane.b32.xlu1 %v1136_v2, %s3640_s13  ;;  %6197 = vst [vmem:[#allocation70_spill] sm:$0xff] %v4302_v58 }
 0x343   : > { %v4316_v60 = vpop.permute.xlu0 %585 }
 0x344   : > { %6200 = vst [vmem:[#allocation73_spill] sm:$0xff] %v4316_v60 }
 0x347   : > { %2739 = vrot.lane.b32.xlu2 %v1138_v1, %s3641_s14  ;;  %v4306_v57 = vpop.permute.xlu1 %760  ;;  %v4312_v15 = vpop.permute.xlu2 %829 }
 0x348   : > { %6198 = vst [vmem:[#allocation71_spill] sm:$0xff] %v4306_v57 }
 0x349   : > { %2737 = vrot.lane.b32.xlu1 %v3944_v30, %s3641_s14 }
 0x34b   : > { %v4322_v24 = vpop.permute.xlu0 %710 }
 0x34c   : > { %6203 = vst [vmem:[#allocation76_spill] sm:$0xff] %v4322_v24 }
 0x34f   : > { %2753 = vrot.lane.b32.xlu2 %v3941_v27, %s3642_s15  ;;  %v4314_v2 = vpop.permute.xlu1 %779  ;;  %v4320_v1 = vpop.permute.xlu2 %847 }
 0x350   : > { %6202 = vst [vmem:[#allocation75_spill] sm:$0xff] %v4320_v1  ;;  %v1261_v35 = vrot.slane %v4314_v2, 4 }
 0x353   : > { %v836_v58 = vpop.permute.xlu0 %835 }
 0x354   : > { %v1735_v42 = vrot.slane %v836_v58, 4 }
 0x357   : > { %v4318_v34 = vpop.permute.xlu1 %791  ;;  %v861_v62 = vpop.permute.xlu2 %860 }
 0x358   : > { %6201 = vst [vmem:[#allocation74_spill] sm:$0xff] %v4318_v34  ;;  %v1747_v1 = vrot.slane %v861_v62, 4 }
 0x35b   : > { %v4332_v13 = vpop.permute.xlu0 %241 }
 0x35c   : > { %6207 = vst [vmem:[#allocation80_spill] sm:$0xff] %v4332_v13 }
 0x35f   : > { %v4324_v30 = vpop.permute.xlu1 %810 }
 0x360   : > { %6204 = vst [vmem:[#allocation77_spill] sm:$0xff] %v4324_v30 }
 0x361   : > { %v4328_v57 = vpop.permute.xlu2 %879 }
 0x363   : > { %v4338_v34 = vpop.permute.xlu0 %366 }
 0x364   : > { %6209 = vst [vmem:[#allocation82_spill] sm:$0xff] %v4338_v34 }
 0x367   : > { %v4326_v11 = vpop.permute.xlu1 %822 }
 0x368   : > { %6205 = vst [vmem:[#allocation78_spill] sm:$0xff] %v4326_v11 }
 0x36b   : > { %v4343_v26 = vpop.permute.xlu0 %491 }
 0x36c   : > { %6210 = vst [vmem:[#allocation83_spill] sm:$0xff] %v4343_v26 }
 0x36f   : > { %v4330_v27 = vpop.permute.xlu1 %841 }
 0x370   : > { %6206 = vst [vmem:[#allocation79_spill] sm:$0xff] %v4330_v27 }
 0x371   : > { %v4334_v12 = vpop.permute.xlu2 %891 }
 0x372   : > { %6208 = vst [vmem:[#allocation81_spill] sm:$0xff] %v4334_v12 }
 0x377   : > { %v4336_v60 = vpop.permute.xlu1 %854 }
 0x37f   : > { %v873_v30 = vpop.permute.xlu1 %872 }
 0x380   : > { %v2643_v26 = vrot.slane %v873_v30, 4 }
 0x381   : > { %v911_v24 = vpop.permute.xlu2 %910 }
 0x382   : > { %v1745_v54 = vrot.slane %v911_v24, 4  ;;  %v1748_v4 = vsel %vm925_vm0, %v911_v24, %v1747_v1  ;;  %v1262_v1 = vsel %vm925_vm0, %v1261_v35, %v4271_v8  ;;  %v1187_v35 = vrot.slane %v4167_v53, 4 }
 0x383   : > { %v1756_v19 = vperm.slane %v1748_v4, %v3813_v39 }
 0x384   : > { %v1746_v11 = vsel %vm925_vm0, %v1745_v54, %v861_v62 }
 0x385   : > { %v1752_v13 = vperm.slane %v1746_v11, %v3813_v39  ;;  %v1793_v17 = vrot.slane %v1756_v19, 4 }
 0x387   : > { %v1781_v9 = vrot.slane %v1752_v13, 4 }
 0x38b   : > { %v886_v45 = vpop.permute.xlu1 %885 }
 0x38c   : > { %v1733_v34 = vrot.slane %v886_v45, 4  ;;  %v1736_v31 = vsel %vm925_vm0, %v886_v45, %v1735_v42  ;;  %v1274_v42 = vsel %vm925_vm0, %v1273_v36, %v4219_v48 }
 0x38d   : > { %v1744_v24 = vperm.slane %v1736_v31, %v3813_v39 }
 0x38e   : > { %v1734_v54 = vsel %vm925_vm0, %v1733_v34, %v836_v58  ;;  %v4368_v34 = vpop.permute.xlu0 %616 }
 0x38f   : > { %v1740_v4 = vperm.slane %v1734_v54, %v3813_v39  ;;  %v4353_v62 = vsel %vm925_vm0, %v1793_v17, %v1744_v24  ;;  %v1795_v11 = vrot.slane %v1744_v24, 4  ;;  %6213 = vst [vmem:[#allocation86_spill] sm:$0xff] %v4368_v34  ;;  %v1268_v24 = vperm.slane %v1262_v1, %v3813_v39  ;;  %v6251_v34 = vld [vmem:[#allocation45_spill] sm:$0xff] }
 0x390   : > { %v1280_v54 = vperm.slane %v1274_v42, %v3813_v39 }
 0x391   : > { %v1783_v45 = vrot.slane %v1740_v4, 4  ;;  %v923_v50 = vpop.permute.xlu2 %922  ;;  %v4360_v29 = vsel %vm925_vm0, %v1781_v9, %v1740_v4  ;;  %v4363_v31 = vsel %vm925_vm0, %v1756_v19, %v1795_v11  ;;  %v1285_v9 = vrot.slane %v4328_v57, 4 }
 0x392   : > { %6211 = vst [vmem:[#allocation84_spill] sm:$0xff] %v4363_v31  ;;  %v2641_v58 = vrot.slane %v923_v50, 4  ;;  %v4366_v17 = vsel %vm925_vm0, %v923_v50, %v2643_v26  ;;  %v1188_v26 = vsel %vm925_vm0, %v4163_v38, %v1187_v35  ;;  %v1245_v50 = vrot.slane %v4264_v44, 4 }
 0x393   : > { %6212 = vst [vmem:[#allocation85_spill] sm:$0xff] %v4366_v17  ;;  %v4373_v36 = vsel %vm925_vm0, %v1752_v13, %v1783_v45  ;;  %v1175_v4 = vrot.slane %v4130_v40, 4  ;;  %v1311_v53 = vrot.slane %v1268_v24, 4  ;;  %v1163_v11 = vrot.slane %v4111_v52, 4 }
 0x394   : > { %v4378_v19 = vsel %vm925_vm0, %v2641_v58, %v873_v30  ;;  %v4386_v13 = vperm.slane %v1188_v26, %v3813_v39  ;;  %v1309_v1 = vrot.slane %v1280_v54, 4  ;;  %v1286_v42 = vsel %vm925_vm0, %v1285_v9, %v4312_v15 }
 0x395   : > { %6214 = vst [vmem:[#allocation87_spill] sm:$0xff] %v4378_v19  ;;  %v927_v30 = vrot.slane %v3791_v28, 4  ;;  %v1246_v38 = vsel %vm925_vm0, %v1245_v50, %v4260_v16  ;;  %v939_v44 = vrot.slane %v3781_v25, 4  ;;  %v1075_v40 = vrot.slane %v4043_v7, 4 }
 0x396   : > { %v1051_v58 = vrot.slane %v4013_v3, 4  ;;  %v1176_v35 = vsel %vm925_vm0, %v4152_v21, %v1175_v4  ;;  %v1292_v9 = vperm.slane %v1286_v42, %v3813_v39  ;;  %v1312_v26 = vsel %vm925_vm0, %v1280_v54, %v1311_v53  ;;  %v4414_v42 = vpop.permute.xlu0 %741 }
 0x397   : > { %v1164_v16 = vsel %vm925_vm0, %v4108_v49, %v1163_v11  ;;  %v1233_v25 = vrot.slane %v4386_v13, 4  ;;  %v1310_v50 = vsel %vm925_vm0, %v1309_v1, %v1268_v24  ;;  %v928_v3 = vsel %vm925_vm0, %v3802_v32, %v927_v30  ;;  %6216 = vst [vmem:[#allocation89_spill] sm:$0xff] %v4414_v42 }
 0x398   : > { %v1063_v21 = vrot.slane %v4096_v63, 4  ;;  %v963_v4 = vrot.slane %v3906_v5, 4  ;;  %v1052_v54 = vsel %vm925_vm0, %v4031_v47, %v1051_v58  ;;  %v1076_v49 = vsel %vm925_vm0, %v4061_v55, %v1075_v40 }
 0x399   : > { %v2726_v45 = vpop.permute.xlu2 %2725  ;;  %v4421_v53 = vperm.slane %v1176_v35, %v3813_v39  ;;  %v1320_v32 = vperm.slane %v1312_v26, %v3917_v33  ;;  %v4427_v63 = vperm.slane %v1164_v16, %v3813_v39  ;;  %v1335_v5 = vrot.slane %v1292_v9, 4 }
 0x39a   : > { %v4396_v52 = vsel %vm3213_vm1, %v1246_v38, %v2726_v45  ;;  %v4431_v1 = vperm.slane %v1310_v50, %v3917_v33  ;;  %v951_v47 = vrot.slane %v3892_v61, 4  ;;  %v1039_v55 = vrot.slane %v3988_v20, 4 }
 0x39b   : > { %6215 = vst [vmem:[#allocation88_spill] sm:$0xff] %v4396_v52  ;;  %v4402_v28 = vpop.permute.xlu1 %904  ;;  %v1151_v30 = vrot.slane %v4074_v43, 4  ;;  %v1234_v45 = vsel %vm925_vm0, %v1233_v25, %v4421_v53  ;;  %v4439_v38 = vperm.slane %v1052_v54, %v3813_v39  ;;  %v4442_v40 = vperm.slane %v1076_v49, %v3813_v39  ;;  %v6247_v52 = vld [vmem:[#allocation58_spill] sm:$0xff] }
 0x39c   : > { %v1297_v7 = vrot.slane %v4402_v28, 4  ;;  %6217 = vst [vmem:[#allocation90_spill] sm:$0xff] %v4431_v1  ;;  %v1064_v26 = vsel %vm925_vm0, %v4058_v56, %v1063_v21  ;;  %v1363_v43 = vrot.slane %v1320_v32, 4  ;;  %v1209_v16 = vrot.slane %v4427_v63, 4 }
 0x39d   : > { %v1152_v61 = vsel %vm925_vm0, %v4093_v46, %v1151_v30  ;;  %v4454_v50 = vperm.slane %v1234_v45, %v3917_v33  ;;  %v2183_v54 = vrot.slane %v4330_v27, 4  ;;  %v964_v46 = vsel %vm925_vm0, %v3900_v0, %v963_v4 }
 0x39e   : > { %v1298_v24 = vsel %vm925_vm0, %v1297_v7, %v4336_v60  ;;  %v1359_v7 = vrot.slane %v4431_v1, 4  ;;  %v4479_v4 = vpop.permute.xlu0 %866 }
 0x39f   : > { %v1304_v11 = vperm.slane %v1298_v24, %v3813_v39  ;;  %v952_v24 = vsel %vm925_vm0, %v3912_v23, %v951_v47  ;;  %v2184_v30 = vsel %vm925_vm0, %v4334_v12, %v2183_v54  ;;  %v940_v23 = vsel %vm925_vm0, %v3820_v41, %v939_v44  ;;  %6219 = vst [vmem:[#allocation92_spill] sm:$0xff] %v4479_v4 }
 0x3a0   : > { %v4483_v47 = vperm.slane %v1064_v26, %v3813_v39  ;;  %v1253_v44 = vrot.slane %v4454_v50, 4  ;;  %v2192_v26 = vperm.slane %v2184_v30, %v3813_v39  ;;  %v1275_v30 = vrot.slane %v4219_v48, 4 }
 0x3a1   : > { %v1333_v58 = vrot.slane %v1304_v11, 4  ;;  %v1336_v35 = vsel %vm925_vm0, %v1304_v11, %v1335_v5  ;;  %v4468_v5 = vperm.slane %v1152_v61, %v3813_v39  ;;  %v1097_v11 = vrot.slane %v4439_v38, 4 }
 0x3a2   : > { %v1344_v20 = vperm.slane %v1336_v35, %v3917_v33  ;;  %v972_v35 = vperm.slane %v964_v46, %v3813_v39 }
 0x3a3   : > { %v1334_v25 = vsel %vm925_vm0, %v1333_v58, %v1292_v9  ;;  %v1040_v9 = vsel %vm925_vm0, %v4009_v51, %v1039_v55  ;;  %v1121_v51 = vrot.slane %v4442_v40, 4  ;;  %v960_v55 = vperm.slane %v952_v24, %v3813_v39 }
 0x3a4   : > { %v1364_v49 = vsel %vm925_vm0, %v1344_v20, %v1363_v43  ;;  %v1361_v56 = vrot.slane %v1344_v20, 4  ;;  %v4459_v21 = vperm.slane %v1334_v25, %v3917_v33  ;;  %v2195_v58 = vrot.slane %v4479_v4, 4 }
 0x3a5   : > { %2759 = vrot.lane.b32.xlu2 %v1364_v49, %s3642_s15  ;;  %v4492_v41 = vperm.slane %v1040_v9, %v3813_v39  ;;  %v936_v43 = vperm.slane %v928_v3, %v3813_v39  ;;  %v1011_v54 = vrot.slane %v960_v55, 4  ;;  %v1287_v49 = vrot.slane %v4312_v15, 4 }
 0x3a6   : > { %6218 = vst [vmem:[#allocation91_spill] sm:$0xff] %v4459_v21  ;;  %v1362_v45 = vsel %vm925_vm0, %v1361_v56, %v1320_v32  ;;  %v1360_v0 = vsel %vm925_vm0, %v4459_v21, %v1359_v7  ;;  %v1210_v32 = vsel %vm925_vm0, %v1209_v16, %v4468_v5  ;;  %v948_v16 = vperm.slane %v940_v23, %v3813_v39 }
 0x3a7   : > { %2743 = vrot.lane.b32.xlu1 %v1362_v45, %s3641_s14  ;;  %2727 = vrot.lane.b32.xlu0 %v1360_v0, %s3640_s13  ;;  %v4498_v61 = vperm.slane %v1210_v32, %v3917_v33  ;;  %v1098_v20 = vsel %vm925_vm0, %v1097_v11, %v4492_v41  ;;  %v1122_v7 = vsel %vm925_vm0, %v1121_v51, %v4483_v47  ;;  %v1009_v24 = vrot.slane %v972_v35, 4  ;;  %s3666_s13 = smov 54  }
 0x3a8   : > { %v2243_v9 = vrot.slane %v2192_v26, 4  ;;  %v1104_v11 = vperm.slane %v1098_v20, %v3917_v33  ;;  %v1299_v45 = vrot.slane %v4336_v60, 4  ;;  %v1128_v15 = vperm.slane %v1122_v7, %v3917_v33 }
 0x3a9   : > { %v1254_v46 = vsel %vm925_vm0, %v1253_v44, %v4498_v61  ;;  %v1133_v51 = vrot.slane %v4276_v6, 4  ;;  %v987_v32 = vrot.slane %v936_v43, 4  ;;  %v1288_v48 = vsel %vm925_vm0, %v4328_v57, %v1287_v49 }
 0x3aa   : > { %v1300_v60 = vsel %vm925_vm0, %v4402_v28, %v1299_v45  ;;  %v985_v44 = vrot.slane %v948_v16, 4  ;;  %v1143_v20 = vrot.slane %v1104_v11, 4  ;;  %v1010_v7 = vsel %vm925_vm0, %v1009_v24, %v960_v55 }
 0x3ab   : > { %v4504_v25 = vpop.permute.xlu1 %916  ;;  %v1276_v6 = vsel %vm925_vm0, %v4222_v22, %v1275_v30  ;;  %v1296_v57 = vperm.slane %v1288_v48, %v3813_v39  ;;  %v1308_v28 = vperm.slane %v1300_v60, %v3813_v39  ;;  %v1016_v30 = vperm.slane %v1010_v7, %v3917_v33 }
 0x3ac   : > { %6220 = vst [vmem:[#allocation93_spill] sm:$0xff] %v4504_v25  ;;  %v2196_v56 = vsel %vm925_vm0, %v4504_v25, %v2195_v58  ;;  %v1012_v58 = vsel %vm925_vm0, %v972_v35, %v1011_v54  ;;  %v1134_v35 = vsel %vm925_vm0, %v1133_v51, %v4267_v14  ;;  %v1144_v22 = vsel %vm925_vm0, %v1128_v15, %v1143_v20  ;;  %v6245_v25 = vld [vmem:[#allocation50_spill] sm:$0xff] }
 0x3ad   : > { %v2204_v3 = vperm.slane %v2196_v56, %v3813_v39  ;;  %2773 = vrot.lane.b32.xlu2 %v1254_v46, %s3643_s16  ;;  %v1141_v56 = vrot.slane %v1128_v15, 4  ;;  %v4544_v55 = vperm.slane %v1012_v58, %v3917_v33  ;;  %v1139_v46 = vrot.slane %v4297_v37, 4 }
 0x3ae   : > { %v1284_v24 = vperm.slane %v1276_v6, %v3813_v39  ;;  %v986_v14 = vsel %vm925_vm0, %v985_v44, %v936_v43  ;;  %v1347_v37 = vrot.slane %v1296_v57, 4  ;;  %v1345_v15 = vrot.slane %v1308_v28, 4 }
 0x3af   : > { %v2241_v0 = vrot.slane %v2204_v3, 4  ;;  %v4520_v23 = vsel %vm925_vm0, %v2204_v3, %v2243_v9  ;;  %2757 = vrot.lane.b32.xlu1 %v4180_v18, %s3642_s15  ;;  %2741 = vrot.lane.b32.xlu0 %v4183_v10, %s3641_s14  ;;  %v1263_v10 = vrot.slane %v4271_v8, 4  ;;  %v2740_v8 = vpop.permute.xlu2 %2739  ;;  %v1142_v3 = vsel %vm925_vm0, %v1141_v56, %v1104_v11  ;;  %v6225_v56 = vld [vmem:[#allocation72_spill] sm:$0xff]  ;;  %s3667_s14 = smov 60  }
 0x3b0   : > { %6221 = vst [vmem:[#allocation94_spill] sm:$0xff] %v4520_v23  ;;  %v988_v43 = vsel %vm925_vm0, %v948_v16, %v987_v32  ;;  %v992_v51 = vperm.slane %v986_v14, %v3917_v33  ;;  %v1321_v11 = vrot.slane %v1284_v24, 4  ;;  %v1348_v48 = vsel %vm925_vm0, %v1308_v28, %v1347_v37  ;;  %v6228_v14 = vld [vmem:[#allocation38_spill] sm:$0xff] }
 0x3b1   : > { %v4534_v18 = vsel %vm925_vm0, %v2241_v0, %v2192_v26  ;;  %v1264_v26 = vsel %vm925_vm0, %v4314_v2, %v1263_v10  ;;  %v1140_v2 = vsel %vm925_vm0, %v4282_v59, %v1139_v46  ;;  %v1033_v0 = vrot.slane %v4544_v55, 4  ;;  %v6224_v59 = vld [vmem:[#allocation41_spill] sm:$0xff] }
 0x3b2   : > { %6222 = vst [vmem:[#allocation95_spill] sm:$0xff] %v4534_v18  ;;  %v1272_v45 = vperm.slane %v1264_v26, %v3813_v39  ;;  %v1521_v60 = vrot.slane %v6224_v59, 4  ;;  %v4570_v58 = vperm.slane %v988_v43, %v3917_v33  ;;  %v1029_v44 = vrot.slane %v1016_v30, 4  ;;  %v6226_v26 = vld [vmem:[#allocation29_spill] sm:$0xff] }
 0x3b3   : > { %v2724_v49 = vpop.permute.xlu1 %2723  ;;  %v1346_v7 = vsel %vm925_vm0, %v1345_v15, %v1296_v57  ;;  %v4574_v10 = vperm.slane %v1348_v48, %v3917_v33  ;;  %v1031_v32 = vrot.slane %v992_v51, 4  ;;  %v1211_v43 = vrot.slane %v4468_v5, 4 }
 0x3b4   : > { %v3215_v54 = vsel %vm3213_vm1, %v1134_v35, %v2724_v49  ;;  %v1323_v20 = vrot.slane %v1272_v45, 4  ;;  %v1034_v16 = vsel %vm925_vm0, %v1033_v0, %v4570_v58  ;;  %v1322_v6 = vsel %vm925_vm0, %v1321_v11, %v1272_v45  ;;  %v6229_v45 = vld [vmem:[#allocation22_spill] sm:$0xff]  ;;  %v6230_v11 = vld [vmem:[#allocation25_spill] sm:$0xff] }
 0x3b5   : > { %2787 = vrot.lane.b32.xlu2 %v1144_v22, %s3644_s17  ;;  %v4555_v9 = vsel %vm3218_vm2, %v3215_v54, %v2740_v8  ;;  %v1522_v28 = vsel %vm925_vm0, %v1521_v60, %v6225_v56  ;;  %v1032_v49 = vsel %vm925_vm0, %v1016_v30, %v1031_v32  ;;  %v1030_v35 = vsel %vm925_vm0, %v1029_v44, %v992_v51  ;;  %v6227_v22 = vld [vmem:[#allocation66_spill] sm:$0xff] }
 0x3b6   : > { %6223 = vst [vmem:[#allocation96_spill] sm:$0xff] %v4555_v9  ;;  %v1352_v57 = vperm.slane %v1346_v7, %v3917_v33  ;;  %v1497_v8 = vrot.slane %v6226_v26, 4  ;;  %v1324_v54 = vsel %vm925_vm0, %v1284_v24, %v1323_v20  ;;  %v1385_v46 = vrot.slane %v6227_v22, 4  ;;  %v6231_v20 = vld [vmem:[#allocation30_spill] sm:$0xff]  ;;  %v6246_v9 = vld [vmem:[#allocation56_spill] sm:$0xff] }
 0x3b7   : > { %2771 = vrot.lane.b32.xlu1 %v1142_v3, %s3643_s16  ;;  %2755 = vrot.lane.b32.xlu0 %v1140_v2, %s3642_s15  ;;  %v1509_v3 = vrot.slane %v6228_v14, 4  ;;  %v1369_v2 = vrot.slane %v4574_v10, 4  ;;  %v1328_v30 = vperm.slane %v1322_v6, %v3917_v33  ;;  %v1409_v37 = vrot.slane %v6229_v45, 4  ;;  %v6233_v6 = vld [vmem:[#allocation2_spill] sm:$0xff]  ;;  %s3668_s15 = smov 58  }
 0x3b8   : > { %v4595_v15 = vperm.slane %v1522_v28, %v3813_v39  ;;  %v1235_v0 = vrot.slane %v4421_v53, 4  ;;  %v4600_v51 = vperm.slane %v1324_v54, %v3917_v33  ;;  %v1365_v24 = vrot.slane %v1352_v57, 4 }
 0x3b9   : > { %v1498_v48 = vsel %vm925_vm0, %v1497_v8, %v6230_v11  ;;  %v1212_v60 = vsel %vm925_vm0, %v4427_v63, %v1211_v43  ;;  %v1485_v7 = vrot.slane %v6231_v20, 4  ;;  %v1367_v32 = vrot.slane %v1328_v30, 4  ;;  %v6235_v8 = vld [vmem:[#allocation14_spill] sm:$0xff] }
 0x3ba   : > { %v1236_v44 = vsel %vm925_vm0, %v4386_v13, %v1235_v0  ;;  %v1370_v53 = vsel %vm925_vm0, %v1369_v2, %v4600_v51  ;;  %v1386_v28 = vsel %vm925_vm0, %v1385_v46, %v6233_v6  ;;  %v1410_v63 = vsel %vm925_vm0, %v1409_v37, %v6235_v8  ;;  %v6252_v20 = vld [vmem:[#allocation42_spill] sm:$0xff] }
 0x3bb   : > { %v1557_v54 = vrot.slane %v4595_v15, 4  ;;  %v1368_v13 = vsel %vm925_vm0, %v1352_v57, %v1367_v32  ;;  %v1220_v43 = vperm.slane %v1212_v60, %v3917_v33  ;;  %v1244_v2 = vperm.slane %v1236_v44, %v3917_v33  ;;  %v6237_v32 = vld [vmem:[#allocation68_spill] sm:$0xff]  ;;  %v6238_v44 = vld [vmem:[#allocation63_spill] sm:$0xff] }
 0x3bc   : > { %v4625_v0 = vperm.slane %v1498_v48, %v3813_v39  ;;  %v1123_v37 = vrot.slane %v4483_v47, 4  ;;  %v4640_v48 = vperm.slane %v1410_v63, %v3813_v39  ;;  %v1099_v60 = vrot.slane %v4492_v41, 4 }
 0x3bd   : > { %2801 = vrot.lane.b32.xlu2 %v1034_v16, %s3645_s18  ;;  %v6232_v16 = vld [vmem:[#allocation34_spill] sm:$0xff]  ;;  %v1259_v17 = vrot.slane %v1220_v43, 4  ;;  %v1257_v23 = vrot.slane %v1244_v2, 4  ;;  %v1255_v18 = vrot.slane %v4498_v61, 4  ;;  %v1609_v12 = vrot.slane %v6245_v25, 4 }
 0x3be   : > { %v1510_v5 = vsel %vm925_vm0, %v1509_v3, %v6232_v16  ;;  %v1366_v3 = vsel %vm925_vm0, %v1365_v24, %v1328_v30  ;;  %v1486_v30 = vsel %vm925_vm0, %v1485_v7, %v6237_v32  ;;  %v4637_v24 = vperm.slane %v1386_v28, %v3813_v39 }
 0x3bf   : > { %2785 = vrot.lane.b32.xlu1 %v1032_v49, %s3644_s17  ;;  %2769 = vrot.lane.b32.xlu0 %v1030_v35, %s3643_s16  ;;  %v6234_v49 = vld [vmem:[#allocation18_spill] sm:$0xff]  ;;  %v4628_v46 = vperm.slane %v1510_v5, %v3813_v39  ;;  %v1533_v7 = vrot.slane %v4625_v0, 4  ;;  %v4651_v28 = vperm.slane %v1486_v30, %v3813_v39  ;;  %v1100_v63 = vsel %vm925_vm0, %v4439_v38, %v1099_v60 }
 0x3c0   : > { %v1397_v35 = vrot.slane %v6234_v49, 4  ;;  %v1124_v41 = vsel %vm925_vm0, %v4442_v40, %v1123_v37  ;;  %v1421_v42 = vrot.slane %v4637_v24, 4  ;;  %v1445_v30 = vrot.slane %v4640_v48, 4 }
 0x3c1   : > { %v1558_v47 = vsel %vm925_vm0, %v1557_v54, %v4628_v46  ;;  %v6240_v54 = vld [vmem:[#allocation77_spill] sm:$0xff]  ;;  %v1258_v40 = vsel %vm925_vm0, %v1257_v23, %v1220_v43  ;;  %v1132_v61 = vperm.slane %v1124_v41, %v3917_v33  ;;  %v1534_v37 = vsel %vm925_vm0, %v1533_v7, %v4651_v28 }
 0x3c2   : > { %v1721_v19 = vrot.slane %v6240_v54, 4  ;;  %v1108_v60 = vperm.slane %v1100_v63, %v3917_v33  ;;  %v6243_v41 = vld [vmem:[#allocation65_spill] sm:$0xff] }
 0x3c3   : > { %v1145_v7 = vrot.slane %v1132_v61, 4 }
 0x3c5   : > { %2807 = vrot.lane.b32.xlu2 %v1370_v53, %s3645_s18  ;;  %v6236_v53 = vld [vmem:[#allocation8_spill] sm:$0xff]  ;;  %v1146_v1 = vsel %vm925_vm0, %v1145_v7, %v1108_v60 }
 0x3c6   : > { %v1373_v57 = vrot.slane %v6236_v53, 4 }
 0x3c7   : > { %2791 = vrot.lane.b32.xlu1 %v1368_v13, %s3644_s17  ;;  %2775 = vrot.lane.b32.xlu0 %v1366_v3, %s3643_s16  ;;  %v6239_v13 = vld [vmem:[#allocation12_spill] sm:$0xff]  ;;  %s3669_s16 = smov 56  }
 0x3c8   : > { %v1374_v5 = vsel %vm925_vm0, %v1373_v57, %v6238_v44  ;;  %v1398_v3 = vsel %vm925_vm0, %v1397_v35, %v6239_v13  ;;  %v1260_v57 = vsel %vm925_vm0, %v1244_v2, %v1259_v17  ;;  %v4661_v35 = vperm.slane %v1558_v47, %v3917_v33  ;;  %v6241_v47 = vld [vmem:[#allocation71_spill] sm:$0xff] }
 0x3c9   : > { %v4667_v38 = vperm.slane %v1374_v5, %v3813_v39  ;;  %v1256_v17 = vsel %vm925_vm0, %v4454_v50, %v1255_v18  ;;  %v4674_v2 = vperm.slane %v1398_v3, %v3813_v39  ;;  %v1722_v23 = vsel %vm925_vm0, %v1721_v19, %v6241_v47  ;;  %v6242_v5 = vld [vmem:[#allocation60_spill] sm:$0xff] }
 0x3ca   : > { %v1581_v43 = vrot.slane %v4661_v35, 4  ;;  %v1621_v3 = vrot.slane %v6242_v5, 4  ;;  %v4694_v63 = vperm.slane %v1722_v23, %v3813_v39  ;;  %v1147_v19 = vrot.slane %v1108_v60, 4 }
 0x3cb   : > { %v1422_v50 = vsel %vm925_vm0, %v1421_v42, %v4667_v38  ;;  %v1446_v18 = vsel %vm925_vm0, %v1445_v30, %v4674_v2  ;;  %v1610_v60 = vsel %vm925_vm0, %v1609_v12, %v6251_v34 }
 0x3cc   : > { %v1148_v30 = vsel %vm925_vm0, %v1132_v61, %v1147_v19  ;;  %v1428_v27 = vperm.slane %v1422_v50, %v3917_v33  ;;  %v1622_v23 = vsel %vm925_vm0, %v1621_v3, %v6246_v9  ;;  %v6249_v61 = vld [vmem:[#allocation52_spill] sm:$0xff]  ;;  %v6250_v19 = vld [vmem:[#allocation73_spill] sm:$0xff] }
 0x3cd   : > { %2821 = vrot.lane.b32.xlu2 %v1260_v57, %s3646_s19  ;;  %v1709_v57 = vrot.slane %v6243_v41, 4 }
 0x3ce   : > { %v1471_v7 = vrot.slane %v1428_v27, 4 }
 0x3cf   : > { %2805 = vrot.lane.b32.xlu1 %v1258_v40, %s3645_s18  ;;  %2789 = vrot.lane.b32.xlu0 %v1256_v17, %s3644_s17  ;;  %v4691_v40 = vperm.slane %v1534_v37, %v3917_v33  ;;  %v6244_v17 = vld [vmem:[#allocation76_spill] sm:$0xff]  ;;  %v1452_v37 = vperm.slane %v1446_v18, %v3917_v33  ;;  %v1710_v31 = vsel %vm925_vm0, %v1709_v57, %v6247_v52  ;;  %v1597_v57 = vrot.slane %v6250_v19, 4  ;;  %s3670_s17 = smov 62  }
 0x3d0   : > { %v1633_v4 = vrot.slane %v6244_v17, 4  ;;  %v1628_v18 = vperm.slane %v1622_v23, %v3813_v39  ;;  %v4718_v3 = vperm.slane %v1710_v31, %v3813_v39  ;;  %v1616_v23 = vperm.slane %v1610_v60, %v3813_v39 }
 0x3d1   : > { %v1582_v42 = vsel %vm925_vm0, %v1581_v43, %v4691_v40  ;;  %v4709_v43 = vpop.permute.xlu0 %272  ;;  %v1598_v26 = vsel %vm925_vm0, %v1597_v57, %v6252_v20 }
 0x3d2   : > { %6248 = vst [vmem:[#allocation41_spill] sm:$0xff] %v4709_v43  ;;  %v1634_v50 = vsel %vm925_vm0, %v1633_v4, %v6249_v61  ;;  %v1469_v43 = vrot.slane %v1452_v37, 4  ;;  %v1472_v4 = vsel %vm925_vm0, %v1452_v37, %v1471_v7  ;;  %v1671_v31 = vrot.slane %v1628_v18, 4 }
 0x3d3   : > { %v1640_v21 = vperm.slane %v1634_v50, %v3813_v39  ;;  %v1604_v7 = vperm.slane %v1598_v26, %v3813_v39 }
 0x3d4   : > { %v1470_v50 = vsel %vm925_vm0, %v1469_v43, %v1428_v27  ;;  %v1411_v27 = vrot.slane %v6235_v8, 4 }
 0x3d5   : > { %2835 = vrot.lane.b32.xlu2 %v1582_v42, %s3647_s20  ;;  %v1757_v42 = vrot.slane %v4694_v63, 4  ;;  %v1669_v60 = vrot.slane %v1640_v21, 4  ;;  %v1647_v26 = vrot.slane %v1604_v7, 4 }
 0x3d7   : > { %2819 = vrot.lane.b32.xlu1 %v1148_v30, %s3646_s19  ;;  %2803 = vrot.lane.b32.xlu0 %v1146_v1, %s3645_s18  ;;  %v1035_v30 = vrot.slane %v4570_v58, 4  ;;  %v1758_v1 = vsel %vm925_vm0, %v1757_v42, %v4718_v3  ;;  %v1788_v42 = vperm.slane %v4360_v29, %v3917_v33  ;;  %v1670_v43 = vsel %vm925_vm0, %v1669_v60, %v1628_v18 }
 0x3d8   : > { %v1764_v58 = vperm.slane %v1758_v1, %v3917_v33  ;;  %v1371_v1 = vrot.slane %v4600_v51, 4  ;;  %v1676_v51 = vperm.slane %v1670_v43, %v3917_v33 }
 0x3d9   : > { %v1036_v12 = vsel %vm925_vm0, %v4544_v55, %v1035_v30  ;;  %v4738_v37 = vpop.permute.xlu0 %397  ;;  %v1645_v55 = vrot.slane %v1616_v23, 4  ;;  %v1672_v30 = vsel %vm925_vm0, %v1640_v21, %v1671_v31  ;;  %v1399_v31 = vrot.slane %v6239_v13, 4 }
 0x3da   : > { %6253 = vst [vmem:[#allocation72_spill] sm:$0xff] %v4738_v37  ;;  %v1807_v57 = vrot.slane %v1764_v58, 4  ;;  %v4749_v37 = vperm.slane %v1672_v30, %v3917_v33  ;;  %v1372_v8 = vsel %vm925_vm0, %v4574_v10, %v1371_v1  ;;  %v1423_v1 = vrot.slane %v4667_v38, 4 }
 0x3db   : > { %v1646_v21 = vsel %vm925_vm0, %v1645_v55, %v1604_v7  ;;  %v1559_v7 = vrot.slane %v4628_v46, 4  ;;  %v1400_v55 = vsel %vm925_vm0, %v6234_v49, %v1399_v31 }
 0x3dc   : > { %v1808_v29 = vsel %vm925_vm0, %v1788_v42, %v1807_v57  ;;  %v1697_v13 = vrot.slane %v4749_v37, 4  ;;  %v1652_v10 = vperm.slane %v1646_v21, %v3917_v33  ;;  %v4792_v43 = vperm.slane %v1400_v55, %v3813_v39 }
 0x3dd   : > { %2849 = vrot.lane.b32.xlu2 %v1472_v4, %s3648_s21  ;;  %v1805_v4 = vrot.slane %v1788_v42, 4  ;;  %v1387_v42 = vrot.slane %v6233_v6, 4  ;;  %v1693_v6 = vrot.slane %v1676_v51, 4  ;;  %v1560_v57 = vsel %vm925_vm0, %v4595_v15, %v1559_v7 }
 0x3df   : > { %2817 = vrot.lane.b32.xlu0 %v1036_v12, %s3646_s19  ;;  %2833 = vrot.lane.b32.xlu1 %v1470_v50, %s3647_s20  ;;  %v1412_v12 = vsel %vm925_vm0, %v6229_v45, %v1411_v27  ;;  %v1806_v18 = vsel %vm925_vm0, %v1805_v4, %v1764_v58  ;;  %v1535_v50 = vrot.slane %v4651_v28, 4  ;;  %v1648_v45 = vsel %vm925_vm0, %v1616_v23, %v1647_v26 }
 0x3e0   : > { %v4766_v60 = vperm.slane %v1412_v12, %v3813_v39  ;;  %v1388_v28 = vsel %vm925_vm0, %v6227_v22, %v1387_v42  ;;  %v4778_v23 = vperm.slane %v1648_v45, %v3917_v33  ;;  %v1375_v4 = vrot.slane %v6238_v44, 4 }
 0x3e1   : > { %v4770_v58 = vpop.permute.xlu0 %522  ;;  %v1536_v30 = vsel %vm925_vm0, %v4625_v0, %v1535_v50  ;;  %v1695_v27 = vrot.slane %v1652_v10, 4  ;;  %v4789_v49 = vperm.slane %v1388_v28, %v3813_v39  ;;  %v1694_v0 = vsel %vm925_vm0, %v1693_v6, %v1652_v10  ;;  %v4839_v6 = vpop.permute.xlu2 %2753 }
 0x3e2   : > { %6254 = vst [vmem:[#allocation66_spill] sm:$0xff] %v4770_v58  ;;  %v1457_v46 = vrot.slane %v4766_v60, 4  ;;  %v1698_v22 = vsel %vm925_vm0, %v1697_v13, %v4778_v23  ;;  %v1544_v44 = vperm.slane %v1536_v30, %v3917_v33  ;;  %v1376_v12 = vsel %vm925_vm0, %v6236_v53, %v1375_v4 }
 0x3e3   : > { %v1696_v15 = vsel %vm925_vm0, %v1676_v51, %v1695_v27  ;;  %v1447_v26 = vrot.slane %v4674_v2, 4  ;;  %v1433_v31 = vrot.slane %v4789_v49, 4  ;;  %v4814_v45 = vperm.slane %v1376_v12, %v3813_v39 }
 0x3e4   : > { %v1458_v21 = vsel %vm925_vm0, %v1457_v46, %v4792_v43  ;;  %v1587_v38 = vrot.slane %v1544_v44, 4  ;;  %v1635_v42 = vrot.slane %v6249_v61, 4  ;;  %v1583_v13 = vrot.slane %v4691_v40, 4 }
 0x3e5   : > { %2855 = vrot.lane.b32.xlu2 %v1808_v29, %s3648_s21  ;;  %v1568_v29 = vperm.slane %v1560_v57, %v3917_v33  ;;  %v1448_v50 = vsel %vm925_vm0, %v4640_v48, %v1447_v26  ;;  %v4819_v2 = vperm.slane %v1458_v21, %v3917_v33  ;;  %v1434_v48 = vsel %vm925_vm0, %v1433_v31, %v4814_v45 }
 0x3e6   : > { %v1456_v7 = vperm.slane %v1448_v50, %v3917_v33  ;;  %v1611_v28 = vrot.slane %v6251_v34, 4  ;;  %v1711_v61 = vrot.slane %v6247_v52, 4  ;;  %v1636_v34 = vsel %vm925_vm0, %v6244_v17, %v1635_v42  ;;  %v6257_v50 = vld [vmem:[#allocation29_spill] sm:$0xff] }
 0x3e7   : > { %2823 = vrot.lane.b32.xlu0 %v1372_v8, %s3646_s19  ;;  %2839 = vrot.lane.b32.xlu1 %v1806_v18, %s3647_s20  ;;  %v1424_v8 = vsel %vm925_vm0, %v4637_v24, %v1423_v1  ;;  %v1723_v18 = vrot.slane %v6241_v47, 4  ;;  %v1585_v51 = vrot.slane %v1568_v29, 4  ;;  %v1588_v47 = vsel %vm925_vm0, %v1568_v29, %v1587_v38 }
 0x3e8   : > { %v1432_v10 = vperm.slane %v1424_v8, %v3917_v33  ;;  %v1612_v30 = vsel %vm925_vm0, %v6245_v25, %v1611_v28  ;;  %v1477_v52 = vrot.slane %v4819_v2, 4  ;;  %v4850_v57 = vperm.slane %v1434_v48, %v3917_v33 }
 0x3e9   : > { %v4816_v53 = vpop.permute.xlu0 %647  ;;  %v1724_v24 = vsel %vm925_vm0, %v6240_v54, %v1723_v18  ;;  %v1584_v54 = vsel %vm925_vm0, %v4661_v35, %v1583_v13  ;;  %v1586_v55 = vsel %vm925_vm0, %v1585_v51, %v1544_v44  ;;  %v1487_v35 = vrot.slane %v6237_v32, 4 }
 0x3ea   : > { %6255 = vst [vmem:[#allocation38_spill] sm:$0xff] %v4816_v53  ;;  %v4837_v40 = vperm.slane %v1724_v24, %v3813_v39  ;;  %v1473_v4 = vrot.slane %v1456_v7, 4  ;;  %v1599_v46 = vrot.slane %v6252_v20, 4  ;;  %v1712_v27 = vsel %vm925_vm0, %v6243_v41, %v1711_v61 }
 0x3eb   : > { %v4857_v25 = vperm.slane %v1612_v30, %v3813_v39  ;;  %v4860_v17 = vperm.slane %v1636_v34, %v3813_v39  ;;  %v1759_v32 = vrot.slane %v4718_v3, 4  ;;  %v1523_v44 = vrot.slane %v6225_v56, 4 }
 0x3ec   : > { %v1478_v41 = vsel %vm925_vm0, %v1477_v52, %v4850_v57  ;;  %v4876_v1 = vperm.slane %v1712_v27, %v3813_v39  ;;  %v1474_v56 = vsel %vm925_vm0, %v1473_v4, %v1432_v10  ;;  %v1511_v12 = vrot.slane %v6232_v16, 4 }
 0x3ed   : > { %2869 = vrot.lane.b32.xlu2 %v1698_v22, %s3649_s22  ;;  %v1623_v22 = vrot.slane %v6246_v9, 4  ;;  %v4869_v9 = vperm.slane %v4353_v62, %v3917_v33  ;;  %v1499_v62 = vrot.slane %v6230_v11, 4  ;;  %v1600_v26 = vsel %vm925_vm0, %v6250_v19, %v1599_v46 }
 0x3ee   : > { %v1792_v21 = vperm.slane %v4373_v36, %v3917_v33  ;;  %v1657_v31 = vrot.slane %v4857_v25, 4  ;;  %v1681_v8 = vrot.slane %v4860_v17, 4  ;;  %v1512_v16 = vsel %vm925_vm0, %v6228_v14, %v1511_v12 }
 0x3ef   : > { %2837 = vrot.lane.b32.xlu0 %v1694_v0, %s3647_s20  ;;  %2853 = vrot.lane.b32.xlu1 %v1696_v15, %s3648_s21  ;;  %v1475_v0 = vrot.slane %v1432_v10, 4  ;;  %v1769_v15 = vrot.slane %v4837_v40, 4  ;;  %v1624_v20 = vsel %vm925_vm0, %v6242_v5, %v1623_v22  ;;  %v1760_v5 = vsel %vm925_vm0, %v4694_v63, %v1759_v32  ;;  %v6258_v10 = vld [vmem:[#allocation30_spill] sm:$0xff]  ;;  %s5991_s20 = scalar_lea.vmem %s6033_s1, %s3477_s9 }
 0x3f0   : > { %v4892_v18 = vperm.slane %v1624_v20, %v3813_v39  ;;  %v1524_v36 = vsel %vm925_vm0, %v6224_v59, %v1523_v44  ;;  %v1813_v63 = vrot.slane %v4869_v9, 4  ;;  %v1768_v19 = vperm.slane %v1760_v5, %v3917_v33 }
 0x3f1   : > { %v4873_v29 = vpop.permute.xlu0 %772  ;;  %v1476_v3 = vsel %vm925_vm0, %v1456_v7, %v1475_v0  ;;  %v1770_v11 = vsel %vm925_vm0, %v1769_v15, %v4876_v1  ;;  %v4907_v51 = vperm.slane %v1600_v26, %v3813_v39  ;;  %v1500_v42 = vsel %vm925_vm0, %v6257_v50, %v1499_v62 }
 0x3f2   : > { %6256 = vst [vmem:[#allocation22_spill] sm:$0xff] %v4873_v29  ;;  %v4912_v24 = vperm.slane %v1770_v11, %v3917_v33  ;;  %v1520_v13 = vperm.slane %v1512_v16, %v3813_v39  ;;  %v1532_v14 = vperm.slane %v1524_v36, %v3813_v39  ;;  %v1682_v48 = vsel %vm925_vm0, %v1681_v8, %v4892_v18 }
 0x3f3   : > { %v1658_v59 = vsel %vm925_vm0, %v1657_v31, %v4907_v51  ;;  %v1488_v7 = vsel %vm925_vm0, %v6258_v10, %v1487_v35  ;;  %v1811_v61 = vrot.slane %v1768_v19, 4  ;;  %v1688_v52 = vperm.slane %v1682_v48, %v3917_v33 }
 0x3f4   : > { %v1814_v28 = vsel %vm925_vm0, %v1813_v63, %v4912_v24  ;;  %v1664_v34 = vperm.slane %v1658_v59, %v3917_v33  ;;  %v1496_v4 = vperm.slane %v1488_v7, %v3813_v39  ;;  %v1571_v35 = vrot.slane %v1520_v13, 4  ;;  %v4963_v63 = vpop.permute.xlu1 %2737  ;;  %v6262_v7 = vld [vmem:[#allocation91_spill] sm:$0xff] }
 0x3f5   : > { %2883 = vrot.lane.b32.xlu2 %v1588_v47, %s3650_s23  ;;  %v1809_v47 = vrot.slane %v1792_v21, 4  ;;  %v1812_v30 = vsel %vm925_vm0, %v1792_v21, %v1811_v61  ;;  %v1569_v22 = vrot.slane %v1532_v14, 4  ;;  %v1701_v44 = vrot.slane %v1688_v52, 4 }
 0x3f6   : > { %v1572_v32 = vsel %vm925_vm0, %v1532_v14, %v1571_v35  ;;  %v1703_v15 = vrot.slane %v1664_v34, 4  ;;  %v1547_v20 = vrot.slane %v1496_v4, 4  ;;  %v1435_v12 = vrot.slane %v4814_v45, 4 }
 0x3f7   : > { %2851 = vrot.lane.b32.xlu0 %v1584_v54, %s3648_s21  ;;  %2867 = vrot.lane.b32.xlu1 %v1586_v55, %s3649_s22  ;;  %v1508_v54 = vperm.slane %v1500_v42, %v3813_v39  ;;  %v1810_v55 = vsel %vm925_vm0, %v1809_v47, %v1768_v19  ;;  %v4942_v5 = vperm.slane %v1572_v32, %v3917_v33  ;;  %v1459_v8 = vrot.slane %v4792_v43, 4  ;;  %v6260_v19 = vld [vmem:[#allocation64_spill] sm:$0xff] }
 0x3f8   : > { %v1702_v21 = vsel %vm925_vm0, %v1701_v44, %v1664_v34  ;;  %v1436_v45 = vsel %vm925_vm0, %v4789_v49, %v1435_v12  ;;  %v2081_v50 = vrot.slane %v6260_v19, 4  ;;  %v6261_v49 = vld [vmem:[#allocation10_spill] sm:$0xff]  ;;  %v1771_v12 = vrot.slane %v4876_v1, 4  ;;  %v6292_v19 = vld [vmem:[#allocation15_spill] sm:$0xff] }
 0x3f9   : > { %v4931_v46 = vpop.permute.xlu0 %897  ;;  %v1545_v0 = vrot.slane %v1508_v54, 4  ;;  %v1548_v11 = vsel %vm925_vm0, %v1508_v54, %v1547_v20  ;;  %v1593_v16 = vrot.slane %v4942_v5, 4  ;;  %v1460_v43 = vsel %vm925_vm0, %v4766_v60, %v1459_v8  ;;  %v6263_v60 = vld [vmem:[#allocation59_spill] sm:$0xff] }
 0x3fa   : > { %6259 = vst [vmem:[#allocation25_spill] sm:$0xff] %v4931_v46  ;;  %v4969_v42 = vperm.slane %v1548_v11, %v3917_v33  ;;  %v1833_v14 = vrot.slane %v6261_v49, 4  ;;  %v1468_v10 = vperm.slane %v1460_v43, %v3917_v33  ;;  %v2082_v61 = vsel %vm925_vm0, %v2081_v50, %v6263_v60  ;;  %v6270_v11 = vld [vmem:[#allocation21_spill] sm:$0xff]  ;;  %v6272_v50 = vld [vmem:[#allocation46_spill] sm:$0xff] }
 0x3fb   : > { %v1546_v62 = vsel %vm925_vm0, %v1545_v0, %v1496_v4  ;;  %v6266_v0 = vld [vmem:[#allocation7_spill] sm:$0xff]  ;;  %v1479_v20 = vrot.slane %v4850_v57, 4  ;;  %v1659_v53 = vrot.slane %v4907_v51, 4 }
 0x3fc   : > { %v1594_v59 = vsel %vm925_vm0, %v1593_v16, %v4969_v42  ;;  %v4990_v32 = vsel %vm925_vm0, %v1833_v14, %v6266_v0  ;;  %v6271_v16 = vld [vmem:[#allocation40_spill] sm:$0xff]  ;;  %v1772_v14 = vsel %vm925_vm0, %v4837_v40, %v1771_v12 }
 0x3fd   : > { %2897 = vrot.lane.b32.xlu2 %v1478_v41, %s3651_s24  ;;  %v1570_v41 = vsel %vm925_vm0, %v1569_v22, %v1520_v13  ;;  %v1444_v13 = vperm.slane %v1436_v45, %v3917_v33  ;;  %v1845_v45 = vrot.slane %v6270_v11, 4  ;;  %v1480_v40 = vsel %vm925_vm0, %v4819_v2, %v1479_v20  ;;  %v6281_v20 = vld [vmem:[#allocation80_spill] sm:$0xff] }
 0x3fe   : > { %v1576_v31 = vperm.slane %v1570_v41, %v3917_v33  ;;  %v1481_v41 = vrot.slane %v1468_v10, 4  ;;  %v1683_v2 = vrot.slane %v4892_v18, 4  ;;  %v1660_v51 = vsel %vm925_vm0, %v4857_v25, %v1659_v53  ;;  %v6287_v25 = vld [vmem:[#allocation33_spill] sm:$0xff] }
 0x3ff   : > { %v4894_v38 = vpop.permute.xlu2 %2759  ;;  %2865 = vrot.lane.b32.xlu0 %v1474_v56, %s3649_s22  ;;  %2881 = vrot.lane.b32.xlu1 %v1476_v3, %s3650_s23  ;;  %v1704_v56 = vsel %vm925_vm0, %v1688_v52, %v1703_v15  ;;  %v1699_v3 = vrot.slane %v4778_v23, 4  ;;  %v6265_v52 = vld [vmem:[#allocation86_spill] sm:$0xff]  ;;  %v1483_v22 = vrot.slane %v1444_v13, 4  ;;  %v6267_v15 = vld [vmem:[#allocation55_spill] sm:$0xff] }
 0x400   : > { %v1589_v47 = vrot.slane %v1576_v31, 4  ;;  %v2057_v4 = vrot.slane %v6265_v52, 4  ;;  %v2069_v44 = vrot.slane %v6267_v15, 4  ;;  %v1482_v12 = vsel %vm925_vm0, %v1481_v41, %v1444_v13 }
 0x401   : > { %v1700_v26 = vsel %vm925_vm0, %v4749_v37, %v1699_v3  ;;  %v1552_v37 = vperm.slane %v1546_v62, %v3917_v33  ;;  %v4961_v36 = vpop.permute.xlu0 %2721  ;;  %v4996_v62 = vperm.slane %v2082_v61, %v3813_v39  ;;  %v1484_v57 = vsel %vm925_vm0, %v1468_v10, %v1483_v22  ;;  %v6275_v61 = vld [vmem:[#allocation51_spill] sm:$0xff]  ;;  %v6276_v10 = vld [vmem:[#allocation82_spill] sm:$0xff] }
 0x402   : > { %v1846_v41 = vsel %vm925_vm0, %v1845_v45, %v6281_v20 }
 0x403   : > { %v1591_v48 = vrot.slane %v1552_v37, 4  ;;  %v1590_v54 = vsel %vm925_vm0, %v1589_v47, %v1552_v37  ;;  %v1969_v37 = vrot.slane %v6271_v16, 4  ;;  %v2058_v47 = vsel %vm925_vm0, %v2057_v4, %v6272_v50  ;;  %v6293_v50 = vld [vmem:[#allocation81_spill] sm:$0xff] }
 0x404   : > { %v2117_v22 = vrot.slane %v4996_v62, 4 }
 0x405   : > { %2903 = vrot.lane.b32.xlu2 %v1814_v28, %s3651_s24  ;;  %v1357_v28 = vrot.slane %v6262_v7, 4  ;;  %v6274_v7 = vld [vmem:[#allocation48_spill] sm:$0xff] }
 0x407   : > { %v4933_v27 = vpop.permute.xlu2 %2773  ;;  %2871 = vrot.lane.b32.xlu0 %v1810_v55, %s3649_s22  ;;  %2887 = vrot.lane.b32.xlu1 %v1812_v30, %s3650_s23  ;;  %v1592_v55 = vsel %vm925_vm0, %v1576_v31, %v1591_v48  ;;  %v6264_v30 = vld [vmem:[#allocation4_spill] sm:$0xff] }
 0x40d   : > { %2917 = vrot.lane.b32.xlu2 %v1704_v56, %s3652_s25  ;;  %v6268_v56 = vld [vmem:[#allocation32_spill] sm:$0xff] }
 0x40e   : > { %v1945_v3 = vrot.slane %v6268_v56, 4 }
 0x40f   : > { %v4952_v23 = vpop.permute.xlu2 %2787  ;;  %2885 = vrot.lane.b32.xlu0 %v1700_v26, %s3650_s23  ;;  %2901 = vrot.lane.b32.xlu1 %v1702_v21, %s3651_s24  ;;  %v6269_v21 = vld [vmem:[#allocation90_spill] sm:$0xff] }
 0x410   : > { %v1358_v31 = vsel %vm925_vm0, %v1357_v28, %v6269_v21  ;;  %v2045_v28 = vrot.slane %v6274_v7, 4  ;;  %v1946_v4 = vsel %vm925_vm0, %v1945_v3, %v6276_v10  ;;  %v5028_v21 = vperm.slane %v2058_v47, %v3813_v39  ;;  %v6278_v3 = vld [vmem:[#allocation84_spill] sm:$0xff] }
 0x411   : > { %v1684_v7 = vsel %vm925_vm0, %v4860_v17, %v1683_v2  ;;  %v6288_v2 = vld [vmem:[#allocation16_spill] sm:$0xff] }
 0x415   : > { %2931 = vrot.lane.b32.xlu2 %v1594_v59, %s3653_s26  ;;  %v6273_v59 = vld [vmem:[#allocation27_spill] sm:$0xff] }
 0x416   : > { %v1933_v48 = vrot.slane %v6273_v59, 4 }
 0x417   : > { %v4984_v35 = vpop.permute.xlu2 %2801  ;;  %2899 = vrot.lane.b32.xlu0 %v1590_v54, %s3651_s24  ;;  %2915 = vrot.lane.b32.xlu1 %v1592_v55, %s3652_s25  ;;  %v2070_v54 = vsel %vm925_vm0, %v2069_v44, %v6275_v61  ;;  %v2181_v61 = vrot.slane %v6293_v50, 4 }
 0x418   : > { %v5036_v34 = vperm.slane %v2070_v54, %v3813_v39 }
 0x419   : > { %v2744_v26 = vpop.permute.xlu1 %2743  ;;  %v2728_v8 = vpop.permute.xlu0 %2727 }
 0x41a   : > { %v3217_v43 = vsel %vm3213_vm1, %v1358_v31, %v2728_v8  ;;  %v1804_v31 = vperm.slane %v6278_v3, %v3917_v33  ;;  %v6279_v8 = vld [vmem:[#allocation20_spill] sm:$0xff]  ;;  %v6283_v3 = vld [vmem:[#allocation43_spill] sm:$0xff]  ;;  %v2118_v45 = vsel %vm925_vm0, %v2117_v22, %v5036_v34 }
 0x41b   : > { %v3222_v1 = vsel %vm3218_vm2, %v3217_v43, %v2744_v26  ;;  %v6277_v26 = vld [vmem:[#allocation37_spill] sm:$0xff]  ;;  %v1857_v43 = vrot.slane %v6279_v8, 4  ;;  %v2046_v54 = vsel %vm925_vm0, %v2045_v28, %v6283_v3  ;;  %v1815_v3 = vrot.slane %v4912_v24, 4 }
 0x41c   : > { %v5016_v55 = vsel %vm3223_vm3, %v3222_v1, %v4894_v38  ;;  %v1970_v44 = vsel %vm925_vm0, %v1969_v37, %v6277_v26  ;;  %v1780_v38 = vperm.slane %v1772_v14, %v3917_v33  ;;  %v6280_v1 = vld [vmem:[#allocation83_spill] sm:$0xff]  ;;  %v6282_v37 = vld [vmem:[#allocation26_spill] sm:$0xff]  ;;  %v5048_v14 = vperm.slane %v1946_v4, %v3813_v39 }
 0x41d   : > { %2945 = vrot.lane.b32.xlu2 %v1484_v57, %s3654_s27  ;;  %v1957_v57 = vrot.slane %v6280_v1, 4  ;;  %v1934_v47 = vsel %vm925_vm0, %v1933_v48, %v6282_v37  ;;  %v5053_v18 = vperm.slane %v1970_v44, %v3813_v39  ;;  %v6284_v48 = vld [vmem:[#allocation88_spill] sm:$0xff]  ;;  %v1817_v46 = vrot.slane %v1804_v31, 4 }
 0x41e   : > { %v1819_v29 = vrot.slane %v1780_v38, 4  ;;  %v5062_v28 = vperm.slane %v2046_v54, %v3813_v39  ;;  %v5072_v52 = vperm.slane %v2118_v45, %v3917_v33  ;;  %v6286_v54 = vld [vmem:[#allocation17_spill] sm:$0xff]  ;;  %v1981_v53 = vrot.slane %v5048_v14, 4 }
 0x41f   : > { %v5039_v13 = vpop.permute.xlu2 %2807  ;;  %2913 = vrot.lane.b32.xlu0 %v1480_v40, %s3652_s25  ;;  %2929 = vrot.lane.b32.xlu1 %v1482_v12, %s3653_s26  ;;  %v2093_v12 = vrot.slane %v5028_v21, 4  ;;  %v1958_v17 = vsel %vm925_vm0, %v1957_v57, %v6287_v25  ;;  %v1816_v24 = vsel %vm925_vm0, %v4869_v9, %v1815_v3  ;;  %v1668_v9 = vperm.slane %v1660_v51, %v3917_v33  ;;  %v6289_v3 = vld [vmem:[#allocation5_spill] sm:$0xff] }
 0x420   : > { %v1820_v22 = vsel %vm925_vm0, %v1804_v31, %v1819_v29  ;;  %6285 = vst [vmem:[#allocation34_spill] sm:$0xff] %v5072_v52  ;;  %v2005_v29 = vrot.slane %v5053_v18, 4  ;;  %v1692_v31 = vperm.slane %v1684_v7, %v3917_v33 }
 0x421   : > { %v2758_v40 = vpop.permute.xlu1 %2757  ;;  %v2742_v58 = vpop.permute.xlu0 %2741  ;;  %v2094_v57 = vsel %vm925_vm0, %v2093_v12, %v5062_v28  ;;  %v1707_v60 = vrot.slane %v1668_v9, 4 }
 0x422   : > { %v3221_v4 = vsel %vm3218_vm2, %v6284_v48, %v2742_v58  ;;  %v1852_v48 = vperm.slane %v1846_v41, %v3813_v39  ;;  %v5092_v41 = vperm.slane %v1934_v47, %v3813_v39  ;;  %v2141_v47 = vrot.slane %v5072_v52, 4 }
 0x423   : > { %v3226_v44 = vsel %vm3223_vm3, %v3221_v4, %v2758_v40  ;;  %v1858_v40 = vsel %vm925_vm0, %v1857_v43, %v6286_v54  ;;  %v1021_v43 = vrot.slane %v6288_v2, 4  ;;  %v5111_v4 = vperm.slane %v4990_v32, %v3813_v39 }
 0x424   : > { %v5076_v58 = vsel %vm3228_vm4, %v3226_v44, %v4933_v27  ;;  %v1818_v27 = vsel %vm925_vm0, %v1817_v46, %v1780_v38  ;;  %v6290_v46 = vrot.slane %v6264_v30, 4  ;;  %v5106_v38 = vperm.slane %v1958_v17, %v3813_v39 }
 0x425   : > { %2951 = vrot.lane.b32.xlu2 %v1820_v22, %s3654_s27  ;;  %v1864_v44 = vperm.slane %v1858_v40, %v3813_v39  ;;  %v1982_v51 = vsel %vm925_vm0, %v1981_v53, %v5092_v41  ;;  %v5119_v17 = vperm.slane %v2094_v57, %v3917_v33  ;;  %v1705_v2 = vrot.slane %v1692_v31, 4  ;;  %v6294_v53 = vld [vmem:[#allocation93_spill] sm:$0xff] }
 0x426   : > { %v1822_v7 = vsel %vm925_vm0, %v6290_v46, %v6289_v3  ;;  %v2006_v46 = vsel %vm925_vm0, %v2005_v29, %v5106_v38  ;;  %v1895_v32 = vrot.slane %v1852_v48, 4  ;;  %v1022_v40 = vsel %vm925_vm0, %v1021_v43, %v6292_v19  ;;  %v6295_v43 = vld [vmem:[#allocation70_spill] sm:$0xff] }
 0x427   : > { %v5094_v45 = vpop.permute.xlu2 %2821  ;;  %2919 = vrot.lane.b32.xlu0 %v1816_v24, %s3652_s25  ;;  %2935 = vrot.lane.b32.xlu1 %v1818_v27, %s3653_s26  ;;  %v6291_v24 = vld [vmem:[#allocation96_spill] sm:$0xff]  ;;  %v2193_v52 = vrot.slane %v6294_v53, 4  ;;  %v3214_v29 = vsel %vm3213_vm1, %v1022_v40, %v4961_v36  ;;  %v1988_v19 = vperm.slane %v1982_v51, %v3917_v33  ;;  %v2012_v50 = vperm.slane %v2006_v46, %v3917_v33  ;;  %v6296_v36 = vld [vmem:[#allocation74_spill] sm:$0xff]  ;;  %v6297_v46 = vld [vmem:[#allocation79_spill] sm:$0xff] }
 0x428   : > { %v2157_v51 = vrot.slane %v6296_v36, 4  ;;  %v2182_v40 = vsel %vm925_vm0, %v2181_v61, %v6297_v46  ;;  %vm3288_vm1 = vcmask 261120  }
 0x429   : > { %v2772_v22 = vpop.permute.xlu1 %2771  ;;  %v2756_v12 = vpop.permute.xlu0 %2755  ;;  %v2031_v46 = vrot.slane %v1988_v19, 4  ;;  %v2029_v36 = vrot.slane %v2012_v50, 4 }
 0x42a   : > { %v3225_v27 = vsel %vm3223_vm3, %v6291_v24, %v2756_v12  ;;  %v2142_v12 = vsel %vm925_vm0, %v2141_v47, %v5119_v17  ;;  %v1893_v24 = vrot.slane %v1864_v44, 4  ;;  %v3219_v47 = vsel %vm3218_vm2, %v3214_v29, %v4963_v63 }
 0x42b   : > { %v3230_v15 = vsel %vm3228_vm4, %v3225_v27, %v2772_v22  ;;  %v2169_v22 = vrot.slane %v6295_v43, 4  ;;  %v1706_v27 = vsel %vm925_vm0, %v1705_v2, %v1668_v9  ;;  %v1896_v9 = vsel %vm925_vm0, %v1864_v44, %v1895_v32 }
 0x42c   : > { %v5132_v57 = vsel %vm3233_vm5, %v3230_v15, %v4952_v23  ;;  %v1708_v23 = vsel %vm925_vm0, %v1692_v31, %v1707_v60  ;;  %v1828_v15 = vperm.slane %v1822_v7, %v3813_v39  ;;  %v1869_v60 = vrot.slane %v5111_v4, 4 }
 0x42d   : > { %2965 = vrot.lane.b32.xlu2 %v2142_v12, %s3655_s28  ;;  %v6298_v12 = vld [vmem:[#allocation92_spill] sm:$0xff]  ;;  %v3224_v7 = vsel %vm3223_vm3, %v3219_v47, %v4839_v6  ;;  %v1894_v29 = vsel %vm925_vm0, %v1893_v24, %v1852_v48  ;;  %v6300_v6 = vld [vmem:[#allocation89_spill] sm:$0xff]  ;;  %v2032_v24 = vsel %vm925_vm0, %v2012_v50, %v2031_v46  ;;  %vm3293_vm2 = vcmask 277504  }
 0x42e   : > { %v2194_v63 = vsel %vm925_vm0, %v2193_v52, %v6298_v12  ;;  %v2188_v52 = vperm.slane %v2182_v40, %v3813_v39  ;;  %v5166_v12 = vperm.slane %v1896_v9, %v3917_v33  ;;  %v2158_v48 = vsel %vm925_vm0, %v2157_v51, %v6300_v6 }
 0x42f   : > { %v5145_v53 = vpop.permute.xlu2 %2835  ;;  %2933 = vrot.lane.b32.xlu0 %v1706_v27, %s3653_s26  ;;  %2949 = vrot.lane.b32.xlu1 %v1708_v23, %s3654_s27  ;;  %v6299_v27 = vld [vmem:[#allocation62_spill] sm:$0xff]  ;;  %v2200_v44 = vperm.slane %v2194_v63, %v3813_v39  ;;  %v1870_v63 = vsel %vm925_vm0, %v1869_v60, %v1828_v15  ;;  %v2030_v51 = vsel %vm925_vm0, %v2029_v36, %v1988_v19  ;;  %vm3298_vm3 = vcmask 293888  }
 0x430   : > { %v2170_v23 = vsel %vm925_vm0, %v2169_v22, %v6299_v27  ;;  %v1595_v22 = vrot.slane %v4969_v42, 4  ;;  %v1900_v50 = vperm.slane %v1894_v29, %v3917_v33  ;;  %v2164_v42 = vperm.slane %v2158_v48, %v3813_v39 }
 0x431   : > { %v2786_v31 = vpop.permute.xlu1 %2785  ;;  %v2770_v2 = vpop.permute.xlu0 %2769  ;;  %v2176_v40 = vperm.slane %v2170_v23, %v3813_v39  ;;  %v1921_v60 = vrot.slane %v5166_v12, 4  ;;  %v1971_v48 = vrot.slane %v6277_v26, 4 }
 0x432   : > { %v3229_v61 = vsel %vm3228_vm4, %v3224_v7, %v2770_v2  ;;  %v1871_v7 = vrot.slane %v1828_v15, 4  ;;  %v1596_v9 = vsel %vm925_vm0, %v4942_v5, %v1595_v22  ;;  %v1876_v5 = vperm.slane %v1870_v63, %v3917_v33 }
 0x433   : > { %v3234_v32 = vsel %vm3233_vm5, %v3229_v61, %v2786_v31  ;;  %v2231_v31 = vrot.slane %v2188_v52, 4  ;;  %v2205_v19 = vrot.slane %v2176_v40, 4  ;;  %v1972_v26 = vsel %vm925_vm0, %v6271_v16, %v1971_v48 }
 0x434   : > { %v5174_v47 = vsel %vm3238_vm6, %v3234_v32, %v4984_v35  ;;  %v2229_v35 = vrot.slane %v2200_v44, 4  ;;  %v1872_v15 = vsel %vm925_vm0, %v5111_v4, %v1871_v7  ;;  %v1917_v32 = vrot.slane %v1900_v50, 4 }
 0x435   : > { %2979 = vrot.lane.b32.xlu2 %v2032_v24, %s3656_s29  ;;  %v2232_v23 = vsel %vm925_vm0, %v2200_v44, %v2231_v31  ;;  %v5196_v46 = vperm.slane %v1872_v15, %v3917_v33  ;;  %v2207_v24 = vrot.slane %v2164_v42, 4  ;;  %v1919_v63 = vrot.slane %v1876_v5, 4 }
 0x436   : > { %v2230_v22 = vsel %vm925_vm0, %v2229_v35, %v2188_v52  ;;  %v5204_v44 = vperm.slane %v2232_v23, %v3917_v33  ;;  %v2206_v52 = vsel %vm925_vm0, %v2205_v19, %v2164_v42  ;;  %v1918_v31 = vsel %vm925_vm0, %v1917_v32, %v1876_v5 }
 0x437   : > { %v5184_v2 = vpop.permute.xlu2 %2849  ;;  %2947 = vrot.lane.b32.xlu0 %v1596_v9, %s3654_s27  ;;  %2963 = vrot.lane.b32.xlu1 %v2030_v51, %s3655_s28  ;;  %v1922_v7 = vsel %vm925_vm0, %v1921_v60, %v5196_v46  ;;  %v1959_v9 = vrot.slane %v6287_v25, 4  ;;  %v1947_v51 = vrot.slane %v6276_v10, 4  ;;  %v1920_v35 = vsel %vm925_vm0, %v1900_v50, %v1919_v63 }
 0x438   : > { %v2236_v15 = vperm.slane %v2230_v22, %v3917_v33  ;;  %v2095_v25 = vrot.slane %v5062_v28, 4  ;;  %v2208_v16 = vsel %vm925_vm0, %v2176_v40, %v2207_v24  ;;  %v1835_v10 = vrot.slane %v6266_v0, 4 }
 0x439   : > { %v2792_v36 = vpop.permute.xlu1 %2791  ;;  %v2776_v29 = vpop.permute.xlu0 %2775  ;;  %v5228_v42 = vperm.slane %v1972_v26, %v3813_v39  ;;  %v2257_v50 = vrot.slane %v5204_v44, 4  ;;  %v2212_v5 = vperm.slane %v2206_v52, %v3917_v33  ;;  %v1960_v28 = vsel %vm925_vm0, %v6280_v1, %v1959_v9 }
 0x43a   : > { %v3232_v61 = vsel %vm3228_vm4, %v5016_v55, %v2776_v29  ;;  %v2119_v19 = vrot.slane %v5036_v34, 4  ;;  %v1948_v0 = vsel %vm925_vm0, %v6268_v56, %v1947_v51  ;;  %v5241_v23 = vperm.slane %v2208_v16, %v3917_v33 }
 0x43b   : > { %v3237_v4 = vsel %vm3233_vm5, %v3232_v61, %v2792_v36  ;;  %v2253_v61 = vrot.slane %v2236_v15, 4  ;;  %v2096_v34 = vsel %vm925_vm0, %v5028_v21, %v2095_v25  ;;  %v2017_v48 = vrot.slane %v5228_v42, 4 }
 0x43c   : > { %v5208_v55 = vsel %vm3238_vm6, %v3237_v4, %v5039_v13  ;;  %v1823_v13 = vrot.slane %v6289_v3, 4  ;;  %v1859_v3 = vrot.slane %v6286_v54, 4  ;;  %v1847_v54 = vrot.slane %v6281_v20, 4 }
 0x43d   : > { %2993 = vrot.lane.b32.xlu2 %v1922_v7, %s3657_s30  ;;  %v2120_v1 = vsel %vm925_vm0, %v4996_v62, %v2119_v19  ;;  %v2258_v56 = vsel %vm925_vm0, %v2257_v50, %v5241_v23  ;;  %v1836_v20 = vsel %vm925_vm0, %v6261_v49, %v1835_v10  ;;  %v5261_v21 = vperm.slane %v1948_v0, %v3813_v39 }
 0x43e   : > { %v1860_v4 = vsel %vm925_vm0, %v6279_v8, %v1859_v3  ;;  %v5264_v62 = vperm.slane %v1960_v28, %v3813_v39  ;;  %v2254_v7 = vsel %vm925_vm0, %v2253_v61, %v2212_v5  ;;  %v2128_v63 = vperm.slane %v2120_v1, %v3917_v33 }
 0x43f   : > { %v5221_v60 = vpop.permute.xlu2 %2855  ;;  %2961 = vrot.lane.b32.xlu0 %v1918_v31, %s3655_s28  ;;  %2977 = vrot.lane.b32.xlu1 %v1920_v35, %s3656_s29  ;;  %v1824_v49 = vsel %vm925_vm0, %v6264_v30, %v1823_v13  ;;  %v1935_v8 = vrot.slane %v6282_v37, 4  ;;  %v5279_v26 = vperm.slane %v1836_v20, %v3813_v39  ;;  %v5282_v52 = vperm.slane %v1860_v4, %v3813_v39 }
 0x440   : > { %v1848_v51 = vsel %vm925_vm0, %v6270_v11, %v1847_v54  ;;  %v2018_v30 = vsel %vm925_vm0, %v2017_v48, %v5264_v62  ;;  %v1983_v31 = vrot.slane %v5092_v41, 4  ;;  %v2007_v35 = vrot.slane %v5106_v38, 4 }
 0x441   : > { %v2806_v36 = vpop.permute.xlu1 %2805  ;;  %v2790_v29 = vpop.permute.xlu0 %2789  ;;  %v1936_v37 = vsel %vm925_vm0, %v6273_v59, %v1935_v8  ;;  %v1993_v25 = vrot.slane %v5261_v21, 4  ;;  %v2145_v11 = vrot.slane %v2128_v63, 4  ;;  %v2171_v38 = vrot.slane %v6299_v27, 4  ;;  %v6303_v8 = vld [vmem:[#allocation74_spill] sm:$0xff] }
 0x442   : > { %v3236_v40 = vsel %vm3233_vm5, %v5076_v58, %v2790_v29  ;;  %v2255_v58 = vrot.slane %v2212_v5, 4  ;;  %v5297_v5 = vperm.slane %v2018_v30, %v3917_v33  ;;  %v1984_v59 = vsel %vm925_vm0, %v5048_v14, %v1983_v31 }
 0x443   : > { %v3241_v32 = vsel %vm3238_vm6, %v3236_v40, %v2806_v36  ;;  %v2008_v41 = vsel %vm925_vm0, %v5053_v18, %v2007_v35  ;;  %v2143_v28 = vrot.slane %v5119_v17, 4  ;;  %v1881_v19 = vrot.slane %v5279_v26, 4  ;;  %v6301_v17 = vld [vmem:[#allocation34_spill] sm:$0xff] }
 0x444   : > { %v5254_v24 = vsel %vm3243_vm7, %v3241_v32, %v5094_v45  ;;  %v2256_v22 = vsel %vm925_vm0, %v2236_v15, %v2255_v58  ;;  %v2104_v45 = vperm.slane %v2096_v34, %v3917_v33  ;;  %v1905_v36 = vrot.slane %v5282_v52, 4  ;;  %v6304_v35 = vld [vmem:[#allocation46_spill] sm:$0xff] }
 0x445   : > { %2999 = vrot.lane.b32.xlu2 %v2258_v56, %s3657_s30  ;;  %v5313_v29 = vperm.slane %v1936_v37, %v3813_v39  ;;  %v5317_v14 = vperm.slane %v1848_v51, %v3813_v39  ;;  %v2144_v27 = vsel %vm925_vm0, %v6301_v17, %v2143_v28  ;;  %v5324_v0 = vperm.slane %v1824_v49, %v3813_v39 }
 0x446   : > { %v2147_v10 = vrot.slane %v2104_v45, 4  ;;  %v2146_v18 = vsel %vm925_vm0, %v2145_v11, %v2104_v45  ;;  %v1992_v54 = vperm.slane %v1984_v59, %v3917_v33  ;;  %v2159_v32 = vrot.slane %v6300_v6, 4  ;;  %v6306_v59 = vld [vmem:[#allocation55_spill] sm:$0xff] }
 0x447   : > { %v5274_v9 = vpop.permute.xlu2 %2869  ;;  %2983 = vrot.lane.b32.xlu1 %v2256_v22, %s3656_s29  ;;  %2967 = vrot.lane.b32.xlu0 %v2254_v7, %s3655_s28  ;;  %v1994_v61 = vsel %vm925_vm0, %v1993_v25, %v5313_v29  ;;  %v2172_v34 = vsel %vm925_vm0, %v6295_v43, %v2171_v38  ;;  %v2037_v1 = vrot.slane %v5297_v5, 4  ;;  %v1882_v58 = vsel %vm925_vm0, %v1881_v19, %v5324_v0  ;;  %v6307_v38 = vld [vmem:[#allocation64_spill] sm:$0xff] }
 0x448   : > { %v2148_v3 = vsel %vm925_vm0, %v2128_v63, %v2147_v10  ;;  %v5342_v4 = vperm.slane %v1994_v61, %v3917_v33  ;;  %v1906_v6 = vsel %vm925_vm0, %v1905_v36, %v5317_v14  ;;  %v5347_v43 = vperm.slane %v2172_v34, %v3813_v39  ;;  %v6302_v63 = vld [vmem:[#allocation51_spill] sm:$0xff] }
 0x449   : > { %v2820_v15 = vpop.permute.xlu1 %2819  ;;  %v2804_v13 = vpop.permute.xlu0 %2803  ;;  %v2035_v45 = vrot.slane %v1992_v54, 4  ;;  %v2071_v49 = vrot.slane %v6302_v63, 4  ;;  %v2160_v51 = vsel %vm925_vm0, %v6303_v8, %v2159_v32  ;;  %v1888_v37 = vperm.slane %v1882_v58, %v3917_v33 }
 0x44a   : > { %v3240_v16 = vsel %vm3238_vm6, %v5132_v57, %v2804_v13  ;;  %v1912_v31 = vperm.slane %v1906_v6, %v3917_v33  ;;  %v6305_v13 = vld [vmem:[#allocation59_spill] sm:$0xff]  ;;  %v2217_v11 = vrot.slane %v5347_v43, 4  ;;  %vm3303_vm4 = vcmask 310272  }
 0x44b   : > { %v3245_v50 = vsel %vm3243_vm7, %v3240_v16, %v2820_v15  ;;  %v2059_v15 = vrot.slane %v6304_v35, 4  ;;  %v2083_v25 = vrot.slane %v6305_v13, 4  ;;  %v1927_v36 = vrot.slane %v1888_v37, 4  ;;  %v6311_v6 = vld [vmem:[#allocation11_spill] sm:$0xff] }
 0x44c   : > { %v5308_v57 = vsel %vm3248_vm8, %v3245_v50, %v5145_v53  ;;  %v2016_v53 = vperm.slane %v2008_v41, %v3917_v33  ;;  %v2072_v41 = vsel %vm925_vm0, %v6306_v59, %v2071_v49  ;;  %vm3308_vm5 = vcmask 326656  }
 0x44d   : > { %3013 = vrot.lane.b32.xlu2 %v2148_v3, %s3658_s2  ;;  %v2084_v3 = vsel %vm925_vm0, %v6307_v38, %v2083_v25  ;;  %v2080_v32 = vperm.slane %v2072_v41, %v3813_v39  ;;  %vm3313_vm6 = vcmask 343040  }
 0x44e   : > { %v2033_v22 = vrot.slane %v2016_v53, 4  ;;  %v2036_v16 = vsel %vm925_vm0, %v2016_v53, %v2035_v45  ;;  %v2092_v34 = vperm.slane %v2084_v3, %v3813_v39  ;;  %v6315_v3 = vld [vmem:[#allocation41_spill] sm:$0xff] }
 0x44f   : > { %v5326_v40 = vpop.permute.xlu2 %2883  ;;  %2997 = vrot.lane.b32.xlu1 %v2146_v18, %s3657_s30  ;;  %2981 = vrot.lane.b32.xlu0 %v2144_v27, %s3656_s29  ;;  %v6308_v18 = vld [vmem:[#allocation86_spill] sm:$0xff]  ;;  %v6309_v27 = vld [vmem:[#allocation43_spill] sm:$0xff]  ;;  %v2131_v35 = vrot.slane %v2080_v32, 4 }
 0x450   : > { %v2034_v10 = vsel %vm925_vm0, %v2033_v22, %v1992_v54  ;;  %v2060_v17 = vsel %vm925_vm0, %v6308_v18, %v2059_v15  ;;  %v2047_v53 = vrot.slane %v6309_v27, 4  ;;  %v1925_v54 = vrot.slane %v1912_v31, 4 }
 0x451   : > { %v2834_v48 = vpop.permute.xlu1 %2833  ;;  %v2818_v56 = vpop.permute.xlu0 %2817  ;;  %v1923_v22 = vrot.slane %v5196_v46, 4  ;;  %v2068_v45 = vperm.slane %v2060_v17, %v3813_v39  ;;  %v6312_v46 = vld [vmem:[#allocation95_spill] sm:$0xff]  ;;  %v2129_v15 = vrot.slane %v2092_v34, 4  ;;  %v2259_v27 = vrot.slane %v5241_v23, 4 }
 0x452   : > { %v3244_v20 = vsel %vm3243_vm7, %v5174_v47, %v2818_v56  ;;  %v2038_v47 = vsel %vm925_vm0, %v2037_v1, %v5342_v4  ;;  %v6310_v56 = vld [vmem:[#allocation48_spill] sm:$0xff]  ;;  %v1926_v63 = vsel %vm925_vm0, %v1925_v54, %v1888_v37 }
 0x453   : > { %v3249_v7 = vsel %vm3248_vm8, %v3244_v20, %v2834_v48  ;;  %v2048_v58 = vsel %vm925_vm0, %v6310_v56, %v2047_v53  ;;  %v1928_v20 = vsel %vm925_vm0, %v1912_v31, %v1927_v36  ;;  %v1924_v49 = vsel %vm925_vm0, %v5166_v12, %v1923_v22 }
 0x454   : > { %v5357_v30 = vsel %vm3253_vm9, %v3249_v7, %v5184_v2  ;;  %v5368_v2 = vperm.slane %v2160_v51, %v3813_v39  ;;  %v2281_v7 = vrot.slane %v6311_v6, 4  ;;  %v2248_v51 = vperm.slane %v6312_v46, %v3917_v33 }
 0x455   : > { %3027 = vrot.lane.b32.xlu2 %v2038_v47, %s3659_s3  ;;  %v6313_v47 = vld [vmem:[#allocation24_spill] sm:$0xff]  ;;  %v2056_v31 = vperm.slane %v2048_v58, %v3813_v39  ;;  %v2105_v37 = vrot.slane %v2068_v45, 4  ;;  %v2132_v12 = vsel %vm925_vm0, %v2092_v34, %v2131_v35  ;;  %v2130_v18 = vsel %vm925_vm0, %v2129_v15, %v2080_v32  ;;  %v6317_v34 = vld [vmem:[#allocation19_spill] sm:$0xff] }
 0x456   : > { %v2218_v1 = vsel %vm925_vm0, %v2217_v11, %v5368_v2  ;;  %v2261_v38 = vrot.slane %v2248_v51, 4  ;;  %v5423_v53 = vperm.slane %v2132_v12, %v3917_v33  ;;  %v2260_v23 = vsel %vm925_vm0, %v5204_v44, %v2259_v27 }
 0x457   : > { %v5370_v50 = vpop.permute.xlu2 %2897  ;;  %3011 = vrot.lane.b32.xlu1 %v2036_v16, %s3658_s2  ;;  %2995 = vrot.lane.b32.xlu0 %v2034_v10, %s3657_s30  ;;  %v2224_v8 = vperm.slane %v2218_v1, %v3917_v33  ;;  %v6314_v10 = vld [vmem:[#allocation3_spill] sm:$0xff]  ;;  %v2293_v1 = vrot.slane %v6317_v34, 4  ;;  %v2136_v56 = vperm.slane %v2130_v18, %v3917_v33  ;;  %v1995_v44 = vrot.slane %v5313_v29, 4 }
 0x458   : > { %v2282_v11 = vsel %vm925_vm0, %v2281_v7, %v6314_v10  ;;  %v1883_v7 = vrot.slane %v5324_v0, 4 }
 0x459   : > { %v2840_v28 = vpop.permute.xlu1 %2839  ;;  %v2824_v19 = vpop.permute.xlu0 %2823  ;;  %v2263_v41 = vrot.slane %v2224_v8, 4  ;;  %v2262_v32 = vsel %vm925_vm0, %v2261_v38, %v2224_v8  ;;  %v5438_v58 = vperm.slane %v2282_v11, %v3813_v39  ;;  %v6318_v8 = vld [vmem:[#allocation6_spill] sm:$0xff]  ;;  %v1996_v0 = vsel %vm925_vm0, %v5261_v21, %v1995_v44 }
 0x45a   : > { %v3247_v61 = vsel %vm3243_vm7, %v5208_v55, %v2824_v19  ;;  %v2107_v19 = vrot.slane %v2056_v31, 4  ;;  %vm3318_vm7 = vcmask 359424  }
 0x45b   : > { %v3252_v48 = vsel %vm3248_vm8, %v3247_v61, %v2840_v28  ;;  %v2264_v17 = vsel %vm925_vm0, %v2248_v51, %v2263_v41  ;;  %v6316_v61 = vld [vmem:[#allocation9_spill] sm:$0xff]  ;;  %v2317_v12 = vrot.slane %v5438_v58, 4  ;;  %v1884_v41 = vsel %vm925_vm0, %v5279_v26, %v1883_v7 }
 0x45c   : > { %v5394_v55 = vsel %vm3253_vm9, %v3252_v48, %v5221_v60  ;;  %v2305_v60 = vrot.slane %v6313_v47, 4  ;;  %v2269_v54 = vrot.slane %v6316_v61, 4  ;;  %v2106_v48 = vsel %vm925_vm0, %v2105_v37, %v2056_v31  ;;  %v6319_v51 = vld [vmem:[#allocation13_spill] sm:$0xff] }
 0x45d   : > { %3041 = vrot.lane.b32.xlu2 %v1928_v20, %s3660_s4  ;;  %v2108_v22 = vsel %vm925_vm0, %v2068_v45, %v2107_v19  ;;  %v2019_v31 = vrot.slane %v5264_v62, 4  ;;  %v2149_v37 = vrot.slane %v2136_v56, 4  ;;  %v1892_v7 = vperm.slane %v1884_v41, %v3917_v33 }
 0x45e   : > { %v2306_v28 = vsel %vm925_vm0, %v2305_v60, %v6315_v3  ;;  %v2270_v46 = vsel %vm925_vm0, %v2269_v54, %v6318_v8  ;;  %v2294_v60 = vsel %vm925_vm0, %v2293_v1, %v6319_v51  ;;  %v5462_v45 = vperm.slane %v2108_v22, %v3917_v33  ;;  %v6321_v54 = vld [vmem:[#allocation78_spill] sm:$0xff] }
 0x45f   : > { %v5407_v13 = vpop.permute.xlu2 %2903  ;;  %3025 = vrot.lane.b32.xlu1 %v1926_v63, %s3659_s3  ;;  %3009 = vrot.lane.b32.xlu0 %v1924_v49, %s3658_s2  ;;  %v2153_v63 = vrot.slane %v5423_v53, 4  ;;  %v2112_v49 = vperm.slane %v2106_v48, %v3917_v33  ;;  %v2020_v62 = vsel %vm925_vm0, %v5228_v42, %v2019_v31  ;;  %v5470_v11 = vperm.slane %v2270_v46, %v3813_v39  ;;  %v6322_v48 = vld [vmem:[#allocation87_spill] sm:$0xff] }
 0x460   : > { %v5481_v38 = vperm.slane %v2294_v60, %v3813_v39  ;;  %v2004_v42 = vperm.slane %v1996_v0, %v3917_v33  ;;  %v2617_v1 = vrot.slane %v6321_v54, 4  ;;  %v6323_v60 = vld [vmem:[#allocation54_spill] sm:$0xff]  ;;  %v2039_v0 = vrot.slane %v5342_v4, 4  ;;  %v6327_v4 = vld [vmem:[#allocation67_spill] sm:$0xff] }
 0x461   : > { %v2854_v25 = vpop.permute.xlu1 %2853  ;;  %v2838_v16 = vpop.permute.xlu0 %2837  ;;  %v2154_v21 = vsel %vm925_vm0, %v2153_v63, %v5462_v45  ;;  %v2505_v31 = vrot.slane %v6323_v60, 4 }
 0x462   : > { %v3251_v59 = vsel %vm3248_vm8, %v5254_v24, %v2838_v16  ;;  %v2043_v22 = vrot.slane %v2004_v42, 4  ;;  %vm3323_vm8 = vcmask 375808  }
 0x463   : > { %v3256_v36 = vsel %vm3253_vm9, %v3251_v59, %v2854_v25 }
 0x464   : > { %v5427_v24 = vsel %vm3258_vm10, %v3256_v36, %v5274_v9  ;;  %v5441_v9 = vperm.slane %v2306_v28, %v3813_v39  ;;  %v1907_v28 = vrot.slane %v5317_v14, 4  ;;  %v2150_v36 = vsel %vm925_vm0, %v2149_v37, %v2112_v49 }
 0x465   : > { %3047 = vrot.lane.b32.xlu2 %v2264_v17, %s3660_s4  ;;  %v6320_v17 = vld [vmem:[#allocation25_spill] sm:$0xff]  ;;  %v2318_v14 = vsel %vm925_vm0, %v2317_v12, %v5470_v11  ;;  %v6325_v12 = vld [vmem:[#allocation22_spill] sm:$0xff] }
 0x466   : > { %v2341_v25 = vrot.slane %v5441_v9, 4  ;;  %v2629_v27 = vrot.slane %v6320_v17, 4  ;;  %v1908_v46 = vsel %vm925_vm0, %v5282_v52, %v1907_v28  ;;  %v2040_v28 = vsel %vm925_vm0, %v5297_v5, %v2039_v0  ;;  %v6329_v5 = vld [vmem:[#allocation53_spill] sm:$0xff]  ;;  %v6332_v0 = vld [vmem:[#allocation39_spill] sm:$0xff] }
 0x467   : > { %v5443_v20 = vpop.permute.xlu2 %2917  ;;  %3031 = vrot.lane.b32.xlu1 %v2262_v32, %s3659_s3  ;;  %3015 = vrot.lane.b32.xlu0 %v2260_v23, %s3658_s2  ;;  %v5501_v32 = vperm.slane %v6322_v48, %v3813_v39  ;;  %v6330_v48 = vld [vmem:[#allocation61_spill] sm:$0xff] }
 0x468   : > { %v2342_v26 = vsel %vm925_vm0, %v2341_v25, %v5481_v38  ;;  %v6326_v25 = vld [vmem:[#allocation75_spill] sm:$0xff] }
 0x469   : > { %v2868_v35 = vpop.permute.xlu1 %2867  ;;  %v2852_v15 = vpop.permute.xlu0 %2851  ;;  %v2677_v52 = vrot.slane %v5501_v32, 4 }
 0x46a   : > { %v3255_v29 = vsel %vm3253_vm9, %v5308_v57, %v2852_v15  ;;  %v2151_v57 = vrot.slane %v2112_v49, 4  ;;  %v5507_v49 = vperm.slane %v2342_v26, %v3917_v33  ;;  %v1931_v26 = vrot.slane %v1892_v7, 4 }
 0x46b   : > { %v3260_v16 = vsel %vm3258_vm10, %v3255_v29, %v2868_v35  ;;  %v6324_v29 = vld [vmem:[#allocation57_spill] sm:$0xff]  ;;  %vm3328_vm9 = vcmask 392192  }
 0x46c   : > { %v5476_v59 = vsel %vm3263_vm11, %v3260_v16, %v5326_v40  ;;  %v2152_v19 = vsel %vm925_vm0, %v2136_v56, %v2151_v57  ;;  %v2028_v40 = vperm.slane %v2020_v62, %v3917_v33  ;;  %v2529_v37 = vrot.slane %v6324_v29, 4 }
 0x46d   : > { %3061 = vrot.lane.b32.xlu2 %v2154_v21, %s3661_s5  ;;  %v2630_v16 = vsel %vm925_vm0, %v2629_v27, %v6326_v25  ;;  %v1916_v21 = vperm.slane %v1908_v46, %v3917_v33  ;;  %v2605_v57 = vrot.slane %v6327_v4, 4  ;;  %v6335_v25 = vld [vmem:[#allocation38_spill] sm:$0xff] }
 0x46e   : > { %v2041_v63 = vrot.slane %v2028_v40, 4  ;;  %v2044_v15 = vsel %vm925_vm0, %v2028_v40, %v2043_v22  ;;  %v5542_v40 = vperm.slane %v2318_v14, %v3917_v33  ;;  %v6331_v22 = vld [vmem:[#allocation66_spill] sm:$0xff] }
 0x46f   : > { %v5489_v18 = vpop.permute.xlu2 %2931  ;;  %3045 = vrot.lane.b32.xlu1 %v2152_v19, %s3660_s4  ;;  %3029 = vrot.lane.b32.xlu0 %v2150_v36, %s3659_s3 }
 0x470   : > { %v2042_v41 = vsel %vm925_vm0, %v2041_v63, %v2004_v42  ;;  %v6328_v42 = vld [vmem:[#allocation47_spill] sm:$0xff]  ;;  %v2219_v63 = vrot.slane %v5368_v2, 4 }
 0x471   : > { %v2882_v23 = vpop.permute.xlu1 %2881  ;;  %v2866_v56 = vpop.permute.xlu0 %2865  ;;  %v2506_v27 = vsel %vm925_vm0, %v2505_v31, %v6328_v42  ;;  %v6333_v31 = vld [vmem:[#allocation49_spill] sm:$0xff] }
 0x472   : > { %v3259_v44 = vsel %vm3258_vm10, %v5357_v30, %v2866_v56  ;;  %v2618_v30 = vsel %vm925_vm0, %v2617_v1, %v6325_v12  ;;  %v2530_v1 = vsel %vm925_vm0, %v2529_v37, %v6329_v5  ;;  %v2365_v56 = vrot.slane %v5507_v49, 4 }
 0x473   : > { %v3264_v35 = vsel %vm3263_vm11, %v3259_v44, %v2882_v23  ;;  %v5532_v19 = vperm.slane %v2618_v30, %v3813_v39  ;;  %v2517_v23 = vrot.slane %v6330_v48, 4  ;;  %v2417_v44 = vrot.slane %v6331_v22, 4 }
 0x474   : > { %v5522_v62 = vsel %vm3268_vm12, %v3264_v35, %v5370_v50  ;;  %v5535_v50 = vperm.slane %v2630_v16, %v3813_v39  ;;  %v2405_v30 = vrot.slane %v6332_v0, 4  ;;  %v2493_v16 = vrot.slane %v6333_v31, 4 }
 0x475   : > { %3075 = vrot.lane.b32.xlu2 %v2044_v15, %s3662_s7  ;;  %v1929_v15 = vrot.slane %v1916_v21, 4  ;;  %v5561_v4 = vperm.slane %v2506_v27, %v3813_v39  ;;  %v5564_v2 = vperm.slane %v2530_v1, %v3813_v39  ;;  %v2653_v17 = vrot.slane %v5532_v19, 4 }
 0x476   : > { %v2678_v14 = vsel %vm925_vm0, %v2677_v52, %v5535_v50  ;;  %v2518_v54 = vsel %vm925_vm0, %v2517_v23, %v6335_v25  ;;  %v2366_v31 = vsel %vm925_vm0, %v2365_v56, %v5542_v40  ;;  %v1932_v1 = vsel %vm925_vm0, %v1916_v21, %v1931_v26 }
 0x477   : > { %v5537_v36 = vpop.permute.xlu2 %2945  ;;  %3059 = vrot.lane.b32.xlu1 %v2042_v41, %s3661_s5  ;;  %3043 = vrot.lane.b32.xlu0 %v2040_v28, %s3660_s4  ;;  %v6334_v41 = vld [vmem:[#allocation69_spill] sm:$0xff]  ;;  %v1930_v23 = vsel %vm925_vm0, %v1929_v15, %v1892_v7  ;;  %v2220_v56 = vsel %vm925_vm0, %v5347_v43, %v2219_v63  ;;  %v2565_v21 = vrot.slane %v5564_v2, 4  ;;  %v5597_v7 = vperm.slane %v2518_v54, %v3813_v39  ;;  %v6340_v63 = vld [vmem:[#allocation36_spill] sm:$0xff] }
 0x478   : > { %v2606_v37 = vsel %vm925_vm0, %v2605_v57, %v6334_v41  ;;  %v5573_v57 = vperm.slane %v2678_v14, %v3917_v33  ;;  %v6337_v14 = vld [vmem:[#allocation35_spill] sm:$0xff]  ;;  %v2418_v15 = vsel %vm925_vm0, %v2417_v44, %v6340_v63 }
 0x479   : > { %v2888_v46 = vpop.permute.xlu1 %2887  ;;  %v2872_v35 = vpop.permute.xlu0 %2871  ;;  %v5580_v27 = vperm.slane %v2606_v37, %v3813_v39  ;;  %v6339_v37 = vld [vmem:[#allocation94_spill] sm:$0xff]  ;;  %v2424_v42 = vperm.slane %v2418_v15, %v3813_v39  ;;  %v2566_v48 = vsel %vm925_vm0, %v2565_v21, %v5597_v7 }
 0x47a   : > { %v3262_v28 = vsel %vm3258_vm10, %v5394_v55, %v2872_v35  ;;  %v2252_v41 = vperm.slane %v6339_v37, %v3917_v33  ;;  %v6341_v37 = vld [vmem:[#allocation72_spill] sm:$0xff]  ;;  %vm3333_vm10 = vcmask 408576  }
 0x47b   : > { %v3267_v52 = vsel %vm3263_vm11, %v3262_v28, %v2888_v46  ;;  %v6336_v46 = vld [vmem:[#allocation31_spill] sm:$0xff]  ;;  %v2406_v28 = vsel %vm925_vm0, %v2405_v30, %v6337_v14  ;;  %v2654_v43 = vsel %vm925_vm0, %v2653_v17, %v5580_v27  ;;  %v2701_v30 = vrot.slane %v5573_v57, 4 }
 0x47c   : > { %v5577_v55 = vsel %vm3268_vm12, %v3267_v52, %v5407_v13  ;;  %v2393_v35 = vrot.slane %v6336_v46, 4  ;;  %v6338_v13 = vld [vmem:[#allocation44_spill] sm:$0xff]  ;;  %v2381_v12 = vrot.slane %v6341_v37, 4  ;;  %v2412_v54 = vperm.slane %v2406_v28, %v3813_v39 }
 0x47d   : > { %3089 = vrot.lane.b32.xlu2 %v2366_v31, %s3663_s10  ;;  %v2494_v52 = vsel %vm925_vm0, %v2493_v16, %v6338_v13  ;;  %v2541_v31 = vrot.slane %v5561_v4, 4  ;;  %v2228_v16 = vperm.slane %v2220_v56, %v3917_v33  ;;  %v5619_v29 = vperm.slane %v2654_v43, %v3917_v33 }
 0x47e   : > { %v5612_v60 = vperm.slane %v2494_v52, %v3813_v39  ;;  %v2265_v56 = vrot.slane %v2252_v41, 4  ;;  %v2453_v37 = vrot.slane %v2424_v42, 4 }
 0x47f   : > { %v5599_v26 = vpop.permute.xlu2 %2951  ;;  %3073 = vrot.lane.b32.xlu1 %v1932_v1, %s3662_s7  ;;  %3057 = vrot.lane.b32.xlu0 %v1930_v23, %s3661_s5  ;;  %v6342_v23 = vld [vmem:[#allocation28_spill] sm:$0xff]  ;;  %v2267_v5 = vrot.slane %v2228_v16, 4 }
 0x480   : > { %v2394_v17 = vsel %vm925_vm0, %v2393_v35, %v6342_v23  ;;  %v2542_v52 = vsel %vm925_vm0, %v2541_v31, %v5612_v60  ;;  %v2702_v35 = vsel %vm925_vm0, %v2701_v30, %v5619_v29  ;;  %v2266_v21 = vsel %vm925_vm0, %v2265_v56, %v2228_v16 }
 0x481   : > { %v2902_v1 = vpop.permute.xlu1 %2901  ;;  %v2886_v13 = vpop.permute.xlu0 %2885  ;;  %v2400_v15 = vperm.slane %v2394_v17, %v3813_v39  ;;  %v2268_v31 = vsel %vm925_vm0, %v2252_v41, %v2267_v5  ;;  %v2572_v30 = vperm.slane %v2566_v48, %v3917_v33 }
 0x482   : > { %v3266_v44 = vsel %vm3263_vm11, %v5427_v24, %v2886_v13  ;;  %v6343_v13 = vld [vmem:[#allocation23_spill] sm:$0xff]  ;;  %vm3343_vm11 = vcmask 441344  }
 0x483   : > { %v3271_v28 = vsel %vm3268_vm12, %v3266_v44, %v2902_v1  ;;  %v2382_v43 = vsel %vm925_vm0, %v2381_v12, %v6343_v13  ;;  %v2455_v1 = vrot.slane %v2412_v54, 4  ;;  %v2548_v44 = vperm.slane %v2542_v52, %v3917_v33 }
 0x484   : > { %v5631_v24 = vsel %vm3273_vm13, %v3271_v28, %v5443_v20  ;;  %v2388_v20 = vperm.slane %v2382_v43, %v3813_v39  ;;  %v2429_v12 = vrot.slane %v2400_v15, 4  ;;  %v2589_v48 = vrot.slane %v2572_v30, 4 }
 0x485   : > { %3095 = vrot.lane.b32.xlu2 %v2702_v35, %s3663_s10  ;;  %v2456_v5 = vsel %vm925_vm0, %v2424_v42, %v2455_v1  ;;  %v2591_v16 = vrot.slane %v2548_v44, 4  ;;  %v2454_v52 = vsel %vm925_vm0, %v2453_v37, %v2412_v54 }
 0x486   : > { %v2464_v43 = vperm.slane %v2456_v5, %v3917_v33  ;;  %v2431_v42 = vrot.slane %v2388_v20, 4  ;;  %v2590_v37 = vsel %vm925_vm0, %v2589_v48, %v2548_v44  ;;  %v2460_v54 = vperm.slane %v2454_v52, %v3917_v33 }
 0x487   : > { %v5641_v25 = vpop.permute.xlu2 %2965  ;;  %3079 = vrot.lane.b32.xlu1 %v2268_v31, %s3662_s7  ;;  %3063 = vrot.lane.b32.xlu0 %v2266_v21, %s3661_s5  ;;  %v2592_v35 = vsel %vm925_vm0, %v2572_v30, %v2591_v16  ;;  %v2155_v31 = vrot.slane %v5462_v45, 4 }
 0x488   : > { %v2481_v30 = vrot.slane %v2464_v43, 4 }
 0x489   : > { %v2916_v17 = vpop.permute.xlu1 %2915  ;;  %v2900_v28 = vpop.permute.xlu0 %2899  ;;  %v2156_v1 = vsel %vm925_vm0, %v5423_v53, %v2155_v31  ;;  %v2283_v53 = vrot.slane %v6314_v10, 4  ;;  %v2319_v10 = vrot.slane %v5470_v11, 4  ;;  %v2567_v31 = vrot.slane %v5597_v7, 4 }
 0x48a   : > { %v3270_v41 = vsel %vm3268_vm12, %v5476_v59, %v2900_v28  ;;  %v2430_v59 = vsel %vm925_vm0, %v2429_v12, %v2388_v20  ;;  %v2343_v20 = vrot.slane %v5481_v38, 4  ;;  %v2271_v11 = vrot.slane %v6318_v8, 4 }
 0x48b   : > { %v3275_v56 = vsel %vm3273_vm13, %v3270_v41, %v2916_v17  ;;  %v2436_v17 = vperm.slane %v2430_v59, %v3917_v33  ;;  %v2477_v41 = vrot.slane %v2460_v54, 4  ;;  %v2543_v59 = vrot.slane %v5612_v60, 4 }
 0x48c   : > { %v5656_v21 = vsel %vm3278_vm14, %v3275_v56, %v5489_v18  ;;  %v2432_v18 = vsel %vm925_vm0, %v2400_v15, %v2431_v42  ;;  %v2344_v15 = vsel %vm925_vm0, %v5441_v9, %v2343_v20  ;;  %v2320_v7 = vsel %vm925_vm0, %v5438_v58, %v2319_v10 }
 0x48d   : > { %3109 = vrot.lane.b32.xlu2 %v2592_v35, %s3664_s11  ;;  %v2440_v5 = vperm.slane %v2432_v18, %v3917_v33  ;;  %v2479_v56 = vrot.slane %v2436_v17, 4  ;;  %v2478_v52 = vsel %vm925_vm0, %v2477_v41, %v2436_v17  ;;  %v5690_v9 = vperm.slane %v2344_v15, %v3917_v33 }
 0x48e   : > { %v2295_v17 = vrot.slane %v6319_v51, 4  ;;  %v2544_v60 = vsel %vm925_vm0, %v5561_v4, %v2543_v59  ;;  %v2568_v20 = vsel %vm925_vm0, %v5564_v2, %v2567_v31  ;;  %vm3348_vm12 = vcmask 457728  }
 0x48f   : > { %v5664_v45 = vpop.permute.xlu2 %2979  ;;  %3077 = vrot.lane.b32.xlu0 %v2156_v1, %s3662_s7  ;;  %3093 = vrot.lane.b32.xlu1 %v2590_v37, %s3663_s10  ;;  %v2482_v48 = vsel %vm925_vm0, %v2481_v30, %v2440_v5  ;;  %v2480_v35 = vsel %vm925_vm0, %v2460_v54, %v2479_v56  ;;  %v2272_v54 = vsel %vm925_vm0, %v6316_v61, %v2271_v11  ;;  %v2483_v30 = vrot.slane %v2440_v5, 4 }
 0x490   : > { %v2369_v8 = vrot.slane %v5690_v9, 4  ;;  %v2367_v61 = vrot.slane %v5542_v40, 4  ;;  %v2280_v51 = vperm.slane %v2272_v54, %v3813_v39  ;;  %v2679_v5 = vrot.slane %v5535_v50, 4 }
 0x491   : > { %v2930_v12 = vpop.permute.xlu1 %2929  ;;  %v2914_v28 = vpop.permute.xlu0 %2913  ;;  %v2484_v58 = vsel %vm925_vm0, %v2464_v43, %v2483_v30  ;;  %v2576_v43 = vperm.slane %v2568_v20, %v3917_v33  ;;  %v2419_v50 = vrot.slane %v6340_v63, 4  ;;  %v2703_v11 = vrot.slane %v5619_v29, 4 }
 0x492   : > { %v3274_v44 = vsel %vm3273_vm13, %v5522_v62, %v2914_v28  ;;  %v2284_v62 = vsel %vm925_vm0, %v6311_v6, %v2283_v53  ;;  %v2307_v6 = vrot.slane %v6315_v3, 4  ;;  %v2296_v28 = vsel %vm925_vm0, %v6317_v34, %v2295_v17 }
 0x493   : > { %v3279_v16 = vsel %vm3278_vm14, %v3274_v44, %v2930_v12  ;;  %v5719_v12 = vperm.slane %v2320_v7, %v3917_v33  ;;  %v2368_v40 = vsel %vm925_vm0, %v5507_v49, %v2367_v61  ;;  %v2304_v34 = vperm.slane %v2296_v28, %v3813_v39  ;;  %v6345_v61 = vld [vmem:[#allocation72_spill] sm:$0xff] }
 0x494   : > { %v5681_v38 = vsel %vm3283_vm15, %v3279_v16, %v5537_v36  ;;  %v5699_v36 = vperm.slane %v2284_v62, %v3813_v39  ;;  %v2308_v4 = vsel %vm925_vm0, %v6313_v47, %v2307_v6  ;;  %v2655_v49 = vrot.slane %v5580_v27, 4 }
 0x495   : > { %3123 = vrot.lane.b32.xlu2 %v2482_v48, %s3665_s12  ;;  %v2370_v2 = vsel %vm925_vm0, %v2369_v8, %v5719_v12  ;;  %v2316_v44 = vperm.slane %v2308_v4, %v3813_v39  ;;  %v2331_v15 = vrot.slane %v2280_v51, 4  ;;  %v2593_v10 = vrot.slane %v2576_v43, 4  ;;  %v6346_v4 = vld [vmem:[#allocation53_spill] sm:$0xff] }
 0x496   : > { %v2329_v47 = vrot.slane %v5699_v36, 4  ;;  %v2407_v62 = vrot.slane %v6337_v14, 4  ;;  %v2680_v27 = vsel %vm925_vm0, %v5501_v32, %v2679_v5  ;;  %v2355_v6 = vrot.slane %v2304_v34, 4 }
 0x497   : > { %v5693_v42 = vpop.permute.xlu2 %2993  ;;  %3091 = vrot.lane.b32.xlu0 %v2478_v52, %s3663_s10  ;;  %3107 = vrot.lane.b32.xlu1 %v2480_v35, %s3664_s11  ;;  %v2656_v35 = vsel %vm925_vm0, %v5532_v19, %v2655_v49  ;;  %v2353_v14 = vrot.slane %v2316_v44, 4  ;;  %v2704_v32 = vsel %vm925_vm0, %v5573_v57, %v2703_v11  ;;  %v2688_v29 = vperm.slane %v2680_v27, %v3917_v33 }
 0x498   : > { %v2408_v59 = vsel %vm925_vm0, %v6332_v0, %v2407_v62  ;;  %v2664_v63 = vperm.slane %v2656_v35, %v3917_v33  ;;  %v2356_v0 = vsel %vm925_vm0, %v2316_v44, %v2355_v6  ;;  %v2420_v57 = vsel %vm925_vm0, %v6331_v22, %v2419_v50  ;;  %v6349_v62 = vld [vmem:[#allocation57_spill] sm:$0xff]  ;;  %v6350_v6 = vld [vmem:[#allocation44_spill] sm:$0xff] }
 0x499   : > { %v2936_v1 = vpop.permute.xlu1 %2935  ;;  %v2920_v37 = vpop.permute.xlu0 %2919  ;;  %v2371_v54 = vrot.slane %v5719_v12, 4  ;;  %v2354_v17 = vsel %vm925_vm0, %v2353_v14, %v2304_v34  ;;  %v2428_v12 = vperm.slane %v2420_v57, %v3813_v39  ;;  %v2495_v14 = vrot.slane %v6350_v6, 4 }
 0x49a   : > { %v3277_v18 = vsel %vm3273_vm13, %v5577_v55, %v2920_v37  ;;  %v2395_v37 = vrot.slane %v6342_v23, 4  ;;  %v2416_v23 = vperm.slane %v2408_v59, %v3813_v39  ;;  %v2707_v20 = vrot.slane %v2664_v63, 4  ;;  %v6351_v59 = vld [vmem:[#allocation54_spill] sm:$0xff] }
 0x49b   : > { %v3282_v3 = vsel %vm3278_vm14, %v3277_v18, %v2936_v1  ;;  %v2330_v1 = vsel %vm925_vm0, %v2329_v47, %v2280_v51  ;;  %v2332_v18 = vsel %vm925_vm0, %v5699_v36, %v2331_v15  ;;  %v5794_v51 = vperm.slane %v2356_v0, %v3917_v33  ;;  %v6347_v47 = vld [vmem:[#allocation61_spill] sm:$0xff] }
 0x49c   : > { %v5723_v55 = vsel %vm3283_vm15, %v3282_v3, %v5599_v26  ;;  %v2552_v26 = vperm.slane %v2544_v60, %v3917_v33  ;;  %v6344_v3 = vld [vmem:[#allocation38_spill] sm:$0xff]  ;;  %v2372_v49 = vsel %vm925_vm0, %v5690_v9, %v2371_v54  ;;  %v2336_v5 = vperm.slane %v2330_v1, %v3917_v33 }
 0x49d   : > { %3139 = vrot.lane.b32.xlu2 %v2484_v58, %s3666_s13  ;;  %v2519_v60 = vrot.slane %v6344_v3, 4  ;;  %v2705_v58 = vrot.slane %v2688_v29, 4  ;;  %v5817_v15 = vperm.slane %v2332_v18, %v3917_v33  ;;  %v6353_v3 = vld [vmem:[#allocation49_spill] sm:$0xff]  ;;  %vm3353_vm13 = vcmask 474112  }
 0x49e   : > { %v2595_v56 = vrot.slane %v2552_v26, 4  ;;  %v2594_v19 = vsel %vm925_vm0, %v2593_v10, %v2552_v26  ;;  %v2467_v26 = vrot.slane %v2416_v23, 4 }
 0x49f   : > { %v5737_v53 = vpop.permute.xlu2 %2999  ;;  %3105 = vrot.lane.b32.xlu0 %v2368_v40, %s3664_s11  ;;  %3121 = vrot.lane.b32.xlu1 %v2370_v2, %s3665_s12  ;;  %v2531_v40 = vrot.slane %v6346_v4, 4  ;;  %v2708_v2 = vsel %vm925_vm0, %v2688_v29, %v2707_v20  ;;  %v2520_v34 = vsel %vm925_vm0, %v6347_v47, %v2519_v60  ;;  %v2706_v44 = vsel %vm925_vm0, %v2705_v58, %v2664_v63  ;;  %v6355_v47 = vld [vmem:[#allocation75_spill] sm:$0xff] }
 0x4a0   : > { %v2596_v31 = vsel %vm925_vm0, %v2576_v43, %v2595_v56  ;;  %v2360_v43 = vperm.slane %v2354_v17, %v3917_v33  ;;  %v6348_v56 = vld [vmem:[#allocation47_spill] sm:$0xff]  ;;  %v2528_v35 = vperm.slane %v2520_v34, %v3813_v39  ;;  %v2468_v11 = vsel %vm925_vm0, %v2428_v12, %v2467_v26  ;;  %v6354_v26 = vld [vmem:[#allocation78_spill] sm:$0xff] }
 0x4a1   : > { %v2950_v41 = vpop.permute.xlu1 %2949  ;;  %v2934_v16 = vpop.permute.xlu0 %2933  ;;  %v2507_v10 = vrot.slane %v6348_v56, 4  ;;  %v2532_v9 = vsel %vm925_vm0, %v6349_v62, %v2531_v40  ;;  %v2375_v63 = vrot.slane %v2336_v5, 4  ;;  %v5836_v57 = vperm.slane %v2468_v11, %v3917_v33  ;;  %v6358_v11 = vld [vmem:[#allocation25_spill] sm:$0xff] }
 0x4a2   : > { %v3281_v48 = vsel %vm3278_vm14, %v5631_v24, %v2934_v16  ;;  %v2465_v16 = vrot.slane %v2428_v12, 4  ;;  %v2540_v1 = vperm.slane %v2532_v9, %v3813_v39  ;;  %v2496_v60 = vsel %vm925_vm0, %v6353_v3, %v2495_v14 }
 0x4a3   : > { %v3286_v52 = vsel %vm3283_vm15, %v3281_v48, %v2950_v41  ;;  %v2504_v12 = vperm.slane %v2496_v60, %v3813_v39  ;;  %v2631_v34 = vrot.slane %v6355_v47, 4  ;;  %vm3363_vm14 = vcmask 506880  }
 0x4a4   : > { %v5759_v24 = vsel %vm3288_vm1, %v3286_v52, %v5641_v25  ;;  %v2383_v25 = vrot.slane %v6343_v13, 4  ;;  %v2396_v13 = vsel %vm925_vm0, %v6336_v46, %v2395_v37  ;;  %v2377_v52 = vrot.slane %v5794_v51, 4 }
 0x4a5   : > { %3141 = vrot.lane.b32.xlu2 %v2596_v31, %s3666_s13  ;;  %v2404_v28 = vperm.slane %v2396_v13, %v3813_v39  ;;  %v2373_v31 = vrot.slane %v2360_v43, 4  ;;  %v2466_v37 = vsel %vm925_vm0, %v2465_v16, %v2416_v23  ;;  %v2579_v13 = vrot.slane %v2528_v35, 4 }
 0x4a6   : > { %v2384_v36 = vsel %vm925_vm0, %v6345_v61, %v2383_v25  ;;  %v2378_v0 = vsel %vm925_vm0, %v2377_v52, %v5817_v15  ;;  %v2376_v23 = vsel %vm925_vm0, %v2360_v43, %v2375_v63  ;;  %v2577_v20 = vrot.slane %v2540_v1, 4  ;;  %v6359_v63 = vld [vmem:[#allocation67_spill] sm:$0xff] }
 0x4a7   : > { %v5772_v7 = vpop.permute.xlu2 %3013  ;;  %3125 = vrot.lane.b32.xlu1 %v2594_v19, %s3665_s12  ;;  %3111 = vrot.lane.b32.xlu0 %v2704_v32, %s3664_s11  ;;  %v2392_v41 = vperm.slane %v2384_v36, %v3813_v39  ;;  %v2441_v48 = vrot.slane %v2404_v28, 4  ;;  %v2508_v19 = vsel %vm925_vm0, %v6351_v59, %v2507_v10  ;;  %v2489_v36 = vrot.slane %v5836_v57, 4 }
 0x4a8   : > { %v2578_v56 = vsel %vm925_vm0, %v2577_v20, %v2528_v35  ;;  %v2555_v52 = vrot.slane %v2504_v12, 4  ;;  %v6357_v35 = vld [vmem:[#allocation69_spill] sm:$0xff]  ;;  %v2632_v6 = vsel %vm925_vm0, %v6358_v11, %v2631_v34 }
 0x4a9   : > { %v2964_v30 = vpop.permute.xlu1 %2963  ;;  %v2948_v8 = vpop.permute.xlu0 %2947  ;;  %v2443_v29 = vrot.slane %v2392_v41, 4  ;;  %v2442_v54 = vsel %vm925_vm0, %v2441_v48, %v2392_v41 }
 0x4aa   : > { %v3285_v22 = vsel %vm3283_vm15, %v5656_v21, %v2948_v8  ;;  %v6352_v8 = vld [vmem:[#allocation22_spill] sm:$0xff]  ;;  %v2448_v61 = vperm.slane %v2442_v54, %v3917_v33  ;;  %vm3358_vm15 = vcmask 490496  }
 0x4ab   : > { %v3290_v46 = vsel %vm3288_vm1, %v3285_v22, %v2964_v30  ;;  %v2374_v30 = vsel %vm925_vm0, %v2373_v31, %v2336_v5  ;;  %v2619_v17 = vrot.slane %v6352_v8, 4  ;;  %v2444_v22 = vsel %vm925_vm0, %v2404_v28, %v2443_v29  ;;  %v6356_v5 = vld [vmem:[#allocation85_spill] sm:$0xff] }
 0x4ac   : > { %v5801_v21 = vsel %vm3293_vm2, %v3290_v46, %v5664_v45  ;;  %v5860_v40 = vperm.slane %v2444_v22, %v3917_v33  ;;  %v2652_v41 = vperm.slane %v6356_v5, %v3813_v39  ;;  %v2487_v48 = vrot.slane %v2448_v61, 4 }
 0x4ad   : > { %3143 = vrot.lane.b32.xlu2 %v2708_v2, %s3666_s13  ;;  %v2580_v2 = vsel %vm925_vm0, %v2540_v1, %v2579_v13  ;;  %v2620_v43 = vsel %vm925_vm0, %v6354_v26, %v2619_v17  ;;  %v2607_v31 = vrot.slane %v6357_v35, 4  ;;  %v2379_v35 = vrot.slane %v5817_v15, 4 }
 0x4ae   : > { %v2490_v10 = vsel %vm925_vm0, %v2489_v36, %v5860_v40  ;;  %v2588_v62 = vperm.slane %v2580_v2, %v3917_v33  ;;  %v2689_v59 = vrot.slane %v2652_v41, 4 }
 0x4af   : > { %v5812_v45 = vpop.permute.xlu2 %3027  ;;  %3127 = vrot.lane.b32.xlu1 %v2706_v44, %s3665_s12  ;;  %3137 = vrot.lane.b32.xlu0 %v2372_v49, %s3666_s13  ;;  %v2608_v29 = vsel %vm925_vm0, %v6359_v63, %v2607_v31 }
 0x4b0   : > { %v2601_v1 = vrot.slane %v2588_v62, 4 }
 0x4b1   : > { %v2978_v27 = vpop.permute.xlu1 %2977  ;;  %v2962_v50 = vpop.permute.xlu0 %2961 }
 0x4b2   : > { %v3289_v32 = vsel %vm3288_vm1, %v5681_v38, %v2962_v50  ;;  %v2516_v38 = vperm.slane %v2508_v19, %v3813_v39 }
 0x4b3   : > { %v3294_v25 = vsel %vm3293_vm2, %v3289_v32, %v2978_v27 }
 0x4b4   : > { %v5841_v18 = vsel %vm3298_vm3, %v3294_v25, %v5693_v42  ;;  %v2472_v42 = vperm.slane %v2466_v37, %v3917_v33  ;;  %v2553_v46 = vrot.slane %v2516_v38, 4  ;;  %v2556_v32 = vsel %vm925_vm0, %v2516_v38, %v2555_v52 }
 0x4b5   : > { %3185 = vrot.lane.b32.xlu2 %v2378_v0, %s3667_s14  ;;  %v2640_v0 = vperm.slane %v2632_v6, %v3813_v39  ;;  %v2616_v38 = vperm.slane %v2608_v29, %v3813_v39  ;;  %v2380_v6 = vsel %vm925_vm0, %v5794_v51, %v2379_v35 }
 0x4b6   : > { %v2485_v49 = vrot.slane %v2472_v42, 4  ;;  %v2488_v27 = vsel %vm925_vm0, %v2472_v42, %v2487_v48  ;;  %v2554_v50 = vsel %vm925_vm0, %v2553_v46, %v2504_v12 }
 0x4b7   : > { %v5852_v58 = vpop.permute.xlu2 %3041  ;;  %3169 = vrot.lane.b32.xlu1 %v2376_v23, %s3668_s15  ;;  %3153 = vrot.lane.b32.xlu0 %v2374_v30, %s3669_s16  ;;  %v2560_v25 = vperm.slane %v2554_v50, %v3917_v33  ;;  %v2564_v30 = vperm.slane %v2556_v32, %v3917_v33  ;;  %v2690_v3 = vsel %vm925_vm0, %v2689_v59, %v2640_v0  ;;  %v2691_v46 = vrot.slane %v2640_v0, 4 }
 0x4b8   : > { %v2486_v14 = vsel %vm925_vm0, %v2485_v49, %v2448_v61  ;;  %v2667_v48 = vrot.slane %v2616_v38, 4 }
 0x4b9   : > { %v2984_v4 = vpop.permute.xlu1 %2983  ;;  %v2968_v28 = vpop.permute.xlu0 %2967  ;;  %v2602_v60 = vsel %vm925_vm0, %v2601_v1, %v2564_v30  ;;  %v2599_v22 = vrot.slane %v2560_v25, 4  ;;  %v2603_v2 = vrot.slane %v2564_v30, 4 }
 0x4ba   : > { %v3292_v44 = vsel %vm3288_vm1, %v5723_v55, %v2968_v28  ;;  %v5880_v55 = vperm.slane %v2620_v43, %v3813_v39  ;;  %v2696_v39 = vperm.slane %v2690_v3, %v3917_v33  ;;  %v2692_v43 = vsel %vm925_vm0, %v2652_v41, %v2691_v46 }
 0x4bb   : > { %v3297_v16 = vsel %vm3293_vm2, %v3292_v44, %v2984_v4  ;;  %v2604_v34 = vsel %vm925_vm0, %v2588_v62, %v2603_v2  ;;  %v2700_v5 = vperm.slane %v2692_v43, %v3917_v33 }
 0x4bc   : > { %v5877_v9 = vsel %vm3298_vm3, %v3297_v16, %v5737_v53  ;;  %v2584_v53 = vperm.slane %v2578_v56, %v3917_v33  ;;  %v2665_v37 = vrot.slane %v5880_v55, 4  ;;  %v2709_v26 = vrot.slane %v2696_v39, 4 }
 0x4bd   : > { %3187 = vrot.lane.b32.xlu2 %v2490_v10, %s3667_s14  ;;  %v2713_v52 = vrot.slane %v2700_v5, 4 }
 0x4be   : > { %v2597_v8 = vrot.slane %v2584_v53, 4  ;;  %v2666_v20 = vsel %vm925_vm0, %v2665_v37, %v2616_v38 }
 0x4bf   : > { %v5890_v19 = vpop.permute.xlu2 %3047  ;;  %3171 = vrot.lane.b32.xlu1 %v2488_v27, %s3668_s15  ;;  %3155 = vrot.lane.b32.xlu0 %v2486_v14, %s3669_s16  ;;  %v2672_v12 = vperm.slane %v2666_v20, %v3917_v33 }
 0x4c0   : > { %v2598_v61 = vsel %vm925_vm0, %v2597_v8, %v2560_v25 }
 0x4c1   : > { %v2998_v54 = vpop.permute.xlu1 %2997  ;;  %v2982_v13 = vpop.permute.xlu0 %2981  ;;  %v2711_v44 = vrot.slane %v2672_v12, 4 }
 0x4c2   : > { %v3296_v23 = vsel %vm3293_vm2, %v5759_v24, %v2982_v13  ;;  %v2600_v24 = vsel %vm925_vm0, %v2584_v53, %v2599_v22  ;;  %v2491_v53 = vrot.slane %v5860_v40, 4  ;;  %vm3388_vm2 = vcmask 523520  }
 0x4c3   : > { %v3301_v17 = vsel %vm3298_vm3, %v3296_v23, %v2998_v54  ;;  %v2712_v16 = vsel %vm925_vm0, %v2696_v39, %v2711_v44 }
 0x4c4   : > { %v3306_v42 = vsel %vm3303_vm4, %v3301_v17, %v5772_v7  ;;  %v2492_v51 = vsel %vm925_vm0, %v5836_v57, %v2491_v53 }
 0x4c5   : > { %3189 = vrot.lane.b32.xlu2 %v2602_v60, %s3667_s14 }
 0x4c7   : > { %v3062_v36 = vpop.permute.xlu2 %3061  ;;  %3173 = vrot.lane.b32.xlu1 %v2600_v24, %s3668_s15  ;;  %3157 = vrot.lane.b32.xlu0 %v2598_v61, %s3669_s16 }
 0x4c9   : > { %v3012_v4 = vpop.permute.xlu1 %3011  ;;  %v2996_v7 = vpop.permute.xlu0 %2995 }
 0x4ca   : > { %v3300_v28 = vsel %vm3298_vm3, %v5801_v21, %v2996_v7  ;;  %v2710_v21 = vsel %vm925_vm0, %v2709_v26, %v2672_v12  ;;  %vm3410_vm3 = vcmask 1048320  }
 0x4cb   : > { %v3305_v47 = vsel %vm3303_vm4, %v3300_v28, %v3012_v4 }
 0x4cc   : > { %v3310_v49 = vsel %vm3308_vm5, %v3305_v47, %v5812_v45  ;;  %v2668_v45 = vsel %vm925_vm0, %v5880_v55, %v2667_v48 }
 0x4cd   : > { %3205 = vrot.lane.b32.xlu2 %v2604_v34, %s3670_s17  ;;  %v2676_v50 = vperm.slane %v2668_v45, %v3917_v33 }
 0x4cf   : > { %v3076_v56 = vpop.permute.xlu2 %3075  ;;  %3175 = vrot.lane.b32.xlu1 %v2712_v16, %s3668_s15  ;;  %3159 = vrot.lane.b32.xlu0 %v2710_v21, %s3669_s16  ;;  %v2714_v11 = vsel %vm925_vm0, %v2713_v52, %v2676_v50  ;;  %v2715_v1 = vrot.slane %v2676_v50, 4 }
 0x4d1   : > { %v3026_v41 = vpop.permute.xlu1 %3025  ;;  %v3010_v10 = vpop.permute.xlu0 %3009  ;;  %v2716_v40 = vsel %vm925_vm0, %v2700_v5, %v2715_v1  ;;  %vm3338_vm0 = vcmask 424960  }
 0x4d2   : > { %v3304_v62 = vsel %vm3303_vm4, %v5841_v18, %v3010_v10 }
 0x4d3   : > { %v3309_v27 = vsel %vm3308_vm5, %v3304_v62, %v3026_v41 }
 0x4d4   : > { %v3314_v31 = vsel %vm3313_vm6, %v3309_v27, %v5852_v58 }
 0x4d7   : > { %3191 = vrot.lane.b32.xlu1 %v2714_v11, %s3667_s14  ;;  %3201 = vrot.lane.b32.xlu0 %v2380_v6, %s3670_s17  ;;  %v3090_v18 = vpop.permute.xlu2 %3089 }
 0x4d9   : > { %v3032_v55 = vpop.permute.xlu1 %3031  ;;  %v3016_v14 = vpop.permute.xlu0 %3015 }
 0x4da   : > { %v3307_v33 = vsel %vm3303_vm4, %v5877_v9, %v3016_v14 }
 0x4db   : > { %v3312_v15 = vsel %vm3308_vm5, %v3307_v33, %v3032_v55 }
 0x4dc   : > { %v3317_v58 = vsel %vm3313_vm6, %v3312_v15, %v5890_v19 }
 0x4df   : > { %3203 = vrot.lane.b32.xlu0 %v2492_v51, %s3670_s17  ;;  %v3096_v63 = vpop.permute.xlu2 %3095 }
 0x4e1   : > { %v3046_v59 = vpop.permute.xlu1 %3045  ;;  %v3030_v32 = vpop.permute.xlu0 %3029 }
 0x4e2   : > { %v3311_v29 = vsel %vm3308_vm5, %v3306_v42, %v3030_v32 }
 0x4e3   : > { %v3316_v9 = vsel %vm3313_vm6, %v3311_v29, %v3046_v59 }
 0x4e4   : > { %v3321_v25 = vsel %vm3318_vm7, %v3316_v9, %v3062_v36 }
 0x4e7   : > { %3207 = vrot.lane.b32.xlu0 %v2716_v40, %s3670_s17  ;;  %v3110_v54 = vpop.permute.xlu2 %3109 }
 0x4e9   : > { %v3060_v19 = vpop.permute.xlu1 %3059  ;;  %v3044_v37 = vpop.permute.xlu0 %3043 }
 0x4ea   : > { %v3315_v57 = vsel %vm3313_vm6, %v3310_v49, %v3044_v37 }
 0x4eb   : > { %v3320_v0 = vsel %vm3318_vm7, %v3315_v57, %v3060_v19 }
 0x4ec   : > { %v3325_v13 = vsel %vm3323_vm8, %v3320_v0, %v3076_v56 }
 0x4ef   : > { %v3124_v3 = vpop.permute.xlu2 %3123 }
 0x4f1   : > { %v3074_v23 = vpop.permute.xlu1 %3073  ;;  %v3058_v30 = vpop.permute.xlu0 %3057 }
 0x4f2   : > { %v3319_v8 = vsel %vm3318_vm7, %v3314_v31, %v3058_v30 }
 0x4f3   : > { %v3324_v38 = vsel %vm3323_vm8, %v3319_v8, %v3074_v23 }
 0x4f4   : > { %v3329_v17 = vsel %vm3328_vm9, %v3324_v38, %v3090_v18 }
 0x4f7   : > { %v3140_v61 = vpop.permute.xlu2 %3139 }
 0x4f9   : > { %v3080_v60 = vpop.permute.xlu1 %3079  ;;  %v3064_v22 = vpop.permute.xlu0 %3063 }
 0x4fa   : > { %v3322_v42 = vsel %vm3318_vm7, %v3317_v58, %v3064_v22 }
 0x4fb   : > { %v3327_v20 = vsel %vm3323_vm8, %v3322_v42, %v3080_v60 }
 0x4fc   : > { %v3332_v24 = vsel %vm3328_vm9, %v3327_v20, %v3096_v63 }
 0x4ff   : > { %v3142_v4 = vpop.permute.xlu2 %3141 }
 0x501   : > { %v3094_v39 = vpop.permute.xlu1 %3093  ;;  %v3078_v36 = vpop.permute.xlu0 %3077 }
 0x502   : > { %v3326_v10 = vsel %vm3323_vm8, %v3321_v25, %v3078_v36 }
 0x503   : > { %v3331_v52 = vsel %vm3328_vm9, %v3326_v10, %v3094_v39 }
 0x504   : > { %v3336_v50 = vsel %vm3333_vm10, %v3331_v52, %v3110_v54 }
 0x507   : > { %v3144_v34 = vpop.permute.xlu2 %3143 }
 0x509   : > { %v3108_v12 = vpop.permute.xlu1 %3107  ;;  %v3092_v46 = vpop.permute.xlu0 %3091 }
 0x50a   : > { %v3330_v7 = vsel %vm3328_vm9, %v3325_v13, %v3092_v46 }
 0x50b   : > { %v3335_v28 = vsel %vm3333_vm10, %v3330_v7, %v3108_v12 }
 0x50c   : > { %v3340_v2 = vsel %vm3338_vm0, %v3335_v28, %v3124_v3 }
 0x50d   : > { %v3345_v26 = vsel %vm3343_vm11, %v3340_v2, %v3140_v61 }
 0x50f   : > { %v3186_v5 = vpop.permute.xlu2 %3185 }
 0x511   : > { %v3122_v43 = vpop.permute.xlu1 %3121  ;;  %v3106_v47 = vpop.permute.xlu0 %3105 }
 0x512   : > { %v3334_v53 = vsel %vm3333_vm10, %v3329_v17, %v3106_v47 }
 0x513   : > { %v3339_v58 = vsel %vm3338_vm0, %v3334_v53, %v3122_v43 }
 0x517   : > { %v3188_v48 = vpop.permute.xlu2 %3187 }
 0x519   : > { %v3126_v44 = vpop.permute.xlu1 %3125  ;;  %v3112_v49 = vpop.permute.xlu0 %3111 }
 0x51a   : > { %v3341_v35 = vsel %vm3338_vm0, %v3336_v50, %v3126_v44  ;;  %v3337_v37 = vsel %vm3333_vm10, %v3332_v24, %v3112_v49 }
 0x51b   : > { %v3346_v11 = vsel %vm3343_vm11, %v3341_v35, %v3142_v4 }
 0x51f   : > { %v3190_v27 = vpop.permute.xlu2 %3189 }
 0x521   : > { %v3128_v16 = vpop.permute.xlu1 %3127  ;;  %v3138_v21 = vpop.permute.xlu0 %3137 }
 0x522   : > { %v3344_v59 = vsel %vm3343_vm11, %v3339_v58, %v3138_v21  ;;  %v3342_v57 = vsel %vm3338_vm0, %v3337_v37, %v3128_v16 }
 0x523   : > { %v3347_v23 = vsel %vm3343_vm11, %v3342_v57, %v3144_v34 }
 0x527   : > { %v3206_v14 = vpop.permute.xlu2 %3205 }
 0x529   : > { %v3170_v56 = vpop.permute.xlu1 %3169  ;;  %v3154_v41 = vpop.permute.xlu0 %3153 }
 0x52a   : > { %v3349_v32 = vsel %vm3348_vm12, %v3344_v59, %v3154_v41 }
 0x52b   : > { %v3354_v63 = vsel %vm3353_vm13, %v3349_v32, %v3170_v56 }
 0x52c   : > { %v3359_v29 = vsel %vm3358_vm15, %v3354_v63, %v3186_v5 }
 0x531   : > { %v3172_v45 = vpop.permute.xlu1 %3171  ;;  %v3156_v62 = vpop.permute.xlu0 %3155 }
 0x532   : > { %v3350_v25 = vsel %vm3348_vm12, %v3345_v26, %v3156_v62 }
 0x533   : > { %v3355_v19 = vsel %vm3353_vm13, %v3350_v25, %v3172_v45 }
 0x534   : > { %v3360_v0 = vsel %vm3358_vm15, %v3355_v19, %v3188_v48 }
 0x539   : > { %v3174_v31 = vpop.permute.xlu1 %3173  ;;  %v3158_v6 = vpop.permute.xlu0 %3157 }
 0x53a   : > { %v3351_v18 = vsel %vm3348_vm12, %v3346_v11, %v3158_v6 }
 0x53b   : > { %v3356_v55 = vsel %vm3353_vm13, %v3351_v18, %v3174_v31 }
 0x53c   : > { %v3361_v33 = vsel %vm3358_vm15, %v3356_v55, %v3190_v27 }
 0x53d   : > { %v3366_v15 = vsel %vm3363_vm14, %v3361_v33, %v3206_v14 }
 0x53e   : > { %3380 = vrot.lane.b32.xlu0 %v3366_v15, %s3655_s28  ;;  %3370 = vst.msk [vmem:[%s5991_s20 + $0x10] sm:$0xff] %vm3288_vm1, %v3366_v15 }
 0x541   : > { %v3160_v51 = vpop.permute.xlu0 %3159  ;;  %v3176_v40 = vpop.permute.xlu1 %3175 }
 0x542   : > { %v3352_v30 = vsel %vm3348_vm12, %v3347_v23, %v3160_v51 }
 0x543   : > { %v3357_v38 = vsel %vm3353_vm13, %v3352_v30, %v3176_v40 }
 0x549   : > { %v3202_v9 = vpop.permute.xlu0 %3201  ;;  %v3192_v8 = vpop.permute.xlu1 %3191 }
 0x54a   : > { %v3364_v1 = vsel %vm3363_vm14, %v3359_v29, %v3202_v9  ;;  %v3362_v17 = vsel %vm3358_vm15, %v3357_v38, %v3192_v8 }
 0x54b   : > { %3368 = vst.msk [vmem:[%s5991_s20] sm:$0xff] %vm3288_vm1, %v3364_v1  ;;  %3376 = vrot.lane.b32.xlu1 %v3364_v1, %s3655_s28 }
 0x551   : > { %v3204_v54 = vpop.permute.xlu0 %3203 }
 0x552   : > { %v3365_v13 = vsel %vm3363_vm14, %v3360_v0, %v3204_v54 }
 0x553   : > { %3369 = vst.msk [vmem:[%s5991_s20 + $0x8] sm:$0xff] %vm3288_vm1, %v3365_v13  ;;  %3400 = vrot.lane.b32.xlu0 %v3365_v13, %s3671_s8  ;;  %3378 = vrot.lane.b32.xlu2 %v3365_v13, %s3655_s28 }
 0x559   : > { %v3208_v3 = vpop.permute.xlu0 %3207 }
 0x55a   : > { %v3367_v60 = vsel %vm3363_vm14, %v3362_v17, %v3208_v3 }
 0x55b   : > { %3371 = vst.msk [vmem:[%s5991_s20 + $0x18] sm:$0xff] %vm3288_vm1, %v3367_v60  ;;  %3398 = vrot.lane.b32.xlu2 %v3364_v1, %s3671_s8  ;;  %3382 = vrot.lane.b32.xlu1 %v3367_v60, %s3655_s28  ;;  %vm3393_vm1 = vcmask 785920  }
 0x563   : > { %3404 = vrot.lane.b32.xlu2 %v3367_v60, %s3671_s8  ;;  %3402 = vrot.lane.b32.xlu1 %v3366_v15, %s3671_s8 }
 0x5ad   : > { %v3379_v42 = vpop.permute.xlu2 %3378 }
 0x5ae   : > { %3390 = vst.msk [vmem:[%s5991_s20 + $0x8] sm:$0xff] %vm3388_vm2, %v3379_v42 }
 0x5af   : > { %3395 = vst.msk [vmem:[%s5991_s20 + $0x8] sm:$0xff] %vm3393_vm1, %v3379_v42 }
 0x5b0   : > { %v3381_v20 = vpop.permute.xlu0 %3380 }
 0x5b1   : > { %3391 = vst.msk [vmem:[%s5991_s20 + $0x10] sm:$0xff] %vm3388_vm2, %v3381_v20 }
 0x5b2   : > { %3396 = vst.msk [vmem:[%s5991_s20 + $0x10] sm:$0xff] %vm3393_vm1, %v3381_v20 }
 0x5b5   : > { %v3399_v24 = vpop.permute.xlu2 %3398 }
 0x5bd   : > { %v3377_v22 = vpop.permute.xlu1 %3376  ;;  %v3405_v12 = vpop.permute.xlu2 %3404 }
 0x5be   : > { %3389 = vst.msk [vmem:[%s5991_s20] sm:$0xff] %vm3388_vm2, %v3377_v22 }
 0x5bf   : > { %3394 = vst.msk [vmem:[%s5991_s20] sm:$0xff] %vm3393_vm1, %v3377_v22 }
 0x5c0   : > { %3411 = vst.msk [vmem:[%s5991_s20] sm:$0xff] %vm3410_vm3, %v3399_v24 }
 0x5c5   : > { %v3401_v39 = vpop.permute.xlu0 %3400 }
 0x5c6   : > { %3412 = vst.msk [vmem:[%s5991_s20 + $0x8] sm:$0xff] %vm3410_vm3, %v3401_v39 }
 0x5cd   : > { %v3383_v61 = vpop.permute.xlu1 %3382 }
 0x5ce   : > { %3392 = vst.msk [vmem:[%s5991_s20 + $0x18] sm:$0xff] %vm3388_vm2, %v3383_v61 }
 0x5cf   : > { %3397 = vst.msk [vmem:[%s5991_s20 + $0x18] sm:$0xff] %vm3393_vm1, %v3383_v61 }
 0x5d0   : > { %3414 = vst.msk [vmem:[%s5991_s20 + $0x18] sm:$0xff] %vm3410_vm3, %v3405_v12 }
 0x5d5   : > { %v3403_v36 = vpop.permute.xlu1 %3402 }
 0x5d6   : > { %3413 = vst.msk [vmem:[%s5991_s20 + $0x10] sm:$0xff] %vm3410_vm3, %v3403_v36 }
 0x5d7 PF: > { %s11_s6 = sadd.s32 1, %s3636_s6  }
 0x5d8   : > { %p8_p4 = scmp.ge.s32.totalorder %s11_s6, 4  }
 0x5da   :  { %10 = sbr.rel (!%p8_p4) target bundleno = 1 (0x1), region = 54 }

</bundles_post_ra>
